<compile_context>
chip_gen: v5e
topology: v5e:2x2
jax: 0.10.0
libtpu: 0.0.40
codegen_flags: <defaults>
</compile_context>

<pallas_src>
import functools

import jax
import jax.numpy as jnp
from jax.experimental import pallas as pl
from jax.experimental.pallas import tpu as pltpu


# ---------------------------------------------------------------------------
# Fused kernel: down-conv matmul -> channel attention -> spatial attention
#               (Toeplitz matmuls) -> residual add.  One image per grid step.
# ---------------------------------------------------------------------------
def _dscb_kernel(H, W, cols_ref, wd_ref, bd_ref, w1_ref, w2_ref,
                 saT_ref, saL_ref, sab_ref, o_ref):
    # cols_ref : (1, H*W, 16*Cin)  bf16   im2col of the padded input (4x4/stride2 taps)
    # wd_ref   : (16*Cin, C)       bf16   down-conv weight as a matrix
    # bd_ref   : (1, C)            f32    down-conv bias
    # w1_ref   : (Cr, C)           f32    channel-attn MLP layer 1 (hidden[k]=sum_c v[c]*w1[k,c])
    # w2_ref   : (Cr, C)           f32    channel-attn MLP layer 2 (out[c]  =sum_k h[k]*w2[k,c])
    # saT_ref  : (2, 7, W, W)      f32    spatial-attn column Toeplitz mats (per channel, per kh)
    # saL_ref  : (7, H, H)         f32    spatial-attn row selector mats (per kh)
    # sab_ref  : SMEM (1,)         f32    spatial-attn conv bias
    # o_ref    : (1, H, W, C)      f32
    C = wd_ref.shape[1]

    # ---- down_model: 4x4 / stride-2 conv as a single im2col matmul ----
    feat = jnp.dot(cols_ref[0], wd_ref[...],
                   preferred_element_type=jnp.float32)            # (H*W, C)
    feat = feat + bd_ref[...]

    # ---- CBAM channel attention (avg/max pool -> shared MLP -> sigmoid) ----
    avg_c = jnp.mean(feat, axis=0, keepdims=True)                  # (1, C)
    max_c = jnp.max(feat, axis=0, keepdims=True)                   # (1, C)
    w1 = w1_ref[...]                                               # (Cr, C)
    w2 = w2_ref[...]                                               # (Cr, C)

    def shared_mlp(v):                                             # v: (1, C)
        h = jnp.maximum(jnp.sum(v * w1, axis=-1, keepdims=True), 0.0)   # (Cr, 1)
        return jnp.sum(h * w2, axis=0, keepdims=True)                   # (1, C)

    ca = jax.nn.sigmoid(shared_mlp(avg_c) + shared_mlp(max_c))     # (1, C)
    y = feat * ca                                                  # (H*W, C)

    # ---- CBAM spatial attention: 7x7 "same" conv as MXU matmuls ----
    # conv = bias + sum_kh L[kh] @ (avg_map @ T[0,kh] + max_map @ T[1,kh])
    # (Toeplitz / selector matrices carry the kernel taps and the zero padding;
    #  no unaligned slices, no padded scratch buffer.)
    y3 = y.reshape(H, W, C)
    a_map = jnp.mean(y3, axis=-1)                                  # (H, W)
    m_map = jnp.max(y3, axis=-1)                                   # (H, W)
    conv = jnp.zeros((H, W), jnp.float32) + sab_ref[0]
    for kh in range(7):
        q = (jnp.dot(a_map, saT_ref[0, kh], preferred_element_type=jnp.float32) +
             jnp.dot(m_map, saT_ref[1, kh], preferred_element_type=jnp.float32))   # (H, W)
        conv = conv + jnp.dot(saL_ref[kh], q, preferred_element_type=jnp.float32)
    sa = jax.nn.sigmoid(conv)                                      # (H, W)

    # ---- out = CBAM(x1) + x1 (residual), lane-dense C=64 store ----
    out = y3 * sa[:, :, None] + feat.reshape(H, W, C)
    o_ref[...] = out[None].astype(o_ref.dtype)


# ---------------------------------------------------------------------------
# Wrapper-side helpers (plain XLA; weights-only / cheap boundary ops)
# ---------------------------------------------------------------------------
def _im2col_stride2(x_nhwc, ksize=4, stride=2, pad=1):
    N, H, W, Cin = x_nhwc.shape
    Ho = (H + 2 * pad - ksize) // stride + 1
    Wo = (W + 2 * pad - ksize) // stride + 1
    xp = jnp.pad(x_nhwc, ((0, 0), (pad, pad), (pad, pad), (0, 0)))
    taps = []
    for kh in range(ksize):
        for kw in range(ksize):
            taps.append(xp[:, kh:kh + stride * Ho:stride,
                           kw:kw + stride * Wo:stride, :])          # (N, Ho, Wo, Cin)
    cols = jnp.concatenate(taps, axis=-1)                           # (N, Ho, Wo, ks*ks*Cin)
    return cols.reshape(N, Ho * Wo, ksize * ksize * Cin), Ho, Wo


def _spatial_attn_mats(w_sa, H, W):
    # Column Toeplitz: T[c, kh, m, j] = w_sa[c, kh, m - j + 3] if 0 <= m-j+3 < 7 else 0
    m = jnp.arange(W)[:, None]
    j = jnp.arange(W)[None, :]
    off = m - j + 3
    valid = (off >= 0) & (off < 7)
    T = jnp.where(valid[None, None], w_sa[:, :, jnp.clip(off, 0, 6)], 0.0)   # (2, 7, W, W)
    # Row selector: L[kh, i, r] = 1 if r == i + kh - 3 (zero rows implement padding)
    i = jnp.arange(H)[None, :, None]
    r = jnp.arange(H)[None, None, :]
    u = jnp.arange(7)[:, None, None]
    L = (r == i + u - 3).astype(jnp.float32)                                  # (7, H, H)
    return T, L


def down_sampling_connection_block(x_nchw, params):
    x = jnp.transpose(x_nchw, (0, 2, 3, 1))              # NCHW -> NHWC (channels on lanes)
    N = x.shape[0]
    Cin = x.shape[-1]
    C = params["down_w"].shape[-1]
    Cr = params["ca_w1"].shape[0]

    cols, Ho, Wo = _im2col_stride2(x)
    K = cols.shape[-1]                                   # 16 * Cin
    cols = cols.astype(jnp.bfloat16)                     # bf16 MXU operands, f32 accumulation
    wd = params["down_w"].reshape(K, C).astype(jnp.bfloat16)
    saT, saL = _spatial_attn_mats(params["sa_w"], Ho, Wo)

    out = pl.pallas_call(
        functools.partial(_dscb_kernel, Ho, Wo),
        out_shape=jax.ShapeDtypeStruct((N, Ho, Wo, C), jnp.float32),
        grid=(N,),
        in_specs=[
            pl.BlockSpec((1, Ho * Wo, K), lambda n: (n, 0, 0)),
            pl.BlockSpec((K, C), lambda n: (0, 0)),
            pl.BlockSpec((1, C), lambda n: (0, 0)),
            pl.BlockSpec((Cr, C), lambda n: (0, 0)),
            pl.BlockSpec((Cr, C), lambda n: (0, 0)),
            pl.BlockSpec((2, 7, Wo, Wo), lambda n: (0, 0, 0, 0)),
            pl.BlockSpec((7, Ho, Ho), lambda n: (0, 0, 0)),
            pl.BlockSpec(memory_space=pltpu.MemorySpace.SMEM),
        ],
        out_specs=pl.BlockSpec((1, Ho, Wo, C), lambda n: (n, 0, 0, 0)),
        compiler_params=pltpu.CompilerParams(dimension_semantics=("parallel",)),
    )(cols, wd, params["down_b"], params["ca_w1"], params["ca_w2"],
      saT, saL, params["sa_b"])
    return jnp.transpose(out, (0, 3, 1, 2))              # back to NCHW


# ---------------------------------------------------------------------------
# Parameters
# ---------------------------------------------------------------------------
def init_params(key, in_nc=16, inner_nc=64, ratio=16):
    cr = max(inner_nc // ratio, 1)
    ks = jax.random.split(key, 4)

    def rnd(k, shape, fan_in):
        return jax.random.normal(k, shape, jnp.float32) * (1.0 / jnp.sqrt(fan_in))

    return {
        # TODO(synk): down_model is an injected nn.Module with no definition in the
        # spec; modeled as Conv2d(in_nc, inner_nc, 4, stride=2, padding=1) (bias=True).
        "down_w": rnd(ks[0], (4, 4, in_nc, inner_nc), 16 * in_nc),   # (kh, kw, Cin, Cout)
        "down_b": jnp.zeros((1, inner_nc), jnp.float32),
        # CBAM channel-attention shared MLP (both 1x1 convs are bias=False).
        "ca_w1": rnd(ks[1], (cr, inner_nc), inner_nc),
        "ca_w2": rnd(ks[2], (cr, inner_nc), cr),
        # CBAM spatial-attention 7x7 conv (2 -> 1 channels, bias=True).
        "sa_w": rnd(ks[3], (2, 7, 7), 2 * 49),
        "sa_b": jnp.zeros((1,), jnp.float32),
    }


# ---------------------------------------------------------------------------
# Pure-JAX reference (independent implementation, uses lax.conv)
# ---------------------------------------------------------------------------
def _reference(x_nchw, params):
    w_oihw = jnp.transpose(params["down_w"], (3, 2, 0, 1))          # (C, Cin, 4, 4)
    feat = jax.lax.conv_general_dilated(
        x_nchw, w_oihw, window_strides=(2, 2), padding=((1, 1), (1, 1)),
        dimension_numbers=("NCHW", "OIHW", "NCHW"))
    feat = feat + params["down_b"].reshape(1, -1, 1, 1)
    # channel attention
    avg = jnp.mean(feat, axis=(2, 3))
    mx = jnp.max(feat, axis=(2, 3))
    w1, w2 = params["ca_w1"], params["ca_w2"]

    def mlp(v):
        return jnp.maximum(v @ w1.T, 0.0) @ w2

    ca = jax.nn.sigmoid(mlp(avg) + mlp(mx))
    y = feat * ca[:, :, None, None]
    # spatial attention
    sa_in = jnp.concatenate([jnp.mean(y, axis=1, keepdims=True),
                             jnp.max(y, axis=1, keepdims=True)], axis=1)
    conv = jax.lax.conv_general_dilated(
        sa_in, params["sa_w"][None], window_strides=(1, 1), padding=((3, 3), (3, 3)),
        dimension_numbers=("NCHW", "OIHW", "NCHW")) + params["sa_b"][0]
    sa = jax.nn.sigmoid(conv)
    return y * sa + feat


if __name__ == "__main__":
    key = jax.random.PRNGKey(0)
    kx, kp = jax.random.split(key)
    # NCHW input: batch=2, in_nc=16, 32x32 spatial -> down-sampled to 64 x 16 x 16
    x = jax.random.normal(kx, (2, 16, 32, 32), jnp.float32)
    params = init_params(kp, in_nc=16, inner_nc=64)

    fwd = jax.jit(down_sampling_connection_block)
    out = jax.block_until_ready(fwd(x, params))
    ref = jax.block_until_ready(_reference(x, params))

    assert out.shape == (2, 64, 16, 16), out.shape
    assert bool(jnp.all(jnp.isfinite(out)))
    err = float(jnp.max(jnp.abs(out - ref)))
    assert err < 1e-1, f"max |kernel - reference| = {err}"   # bf16 matmul drift only
    print("KERNEL_OK")
</pallas_src>

<mosaic_0001>
module attributes {stable_mosaic.version = 11 : i64} {
  func.func @_dscb_kernel(%arg0: i32, %arg1: memref<1x256x256xbf16, #tpu.memory_space<vmem>>, %arg2: memref<256x64xbf16, #tpu.memory_space<vmem>>, %arg3: memref<1x64xf32, #tpu.memory_space<vmem>>, %arg4: memref<4x64xf32, #tpu.memory_space<vmem>>, %arg5: memref<4x64xf32, #tpu.memory_space<vmem>>, %arg6: memref<2x7x16x16xf32, #tpu.memory_space<vmem>>, %arg7: memref<7x16x16xf32, #tpu.memory_space<vmem>>, %arg8: memref<1xf32, #tpu.memory_space<smem>>, %arg9: memref<1x16x16x64xf32, #tpu.memory_space<vmem>>) attributes {dimension_semantics = [#tpu.dimension_semantics<parallel>], iteration_bounds = array<i64: 2>, scalar_prefetch = 0 : i64, scratch_operands = 0 : i64, tpu.core_type = #tpu.core_type<tc>, window_params = [{transform_indices = @transform_0, window_bounds = array<i64: 1, 256, 256>}, {pipeline_mode = #tpu.pipeline_mode<synchronous>, transform_indices = @transform_1, window_bounds = array<i64: 256, 64>}, {pipeline_mode = #tpu.pipeline_mode<synchronous>, transform_indices = @transform_2, window_bounds = array<i64: 1, 64>}, {pipeline_mode = #tpu.pipeline_mode<synchronous>, transform_indices = @transform_3, window_bounds = array<i64: 4, 64>}, {pipeline_mode = #tpu.pipeline_mode<synchronous>, transform_indices = @transform_4, window_bounds = array<i64: 4, 64>}, {pipeline_mode = #tpu.pipeline_mode<synchronous>, transform_indices = @transform_5, window_bounds = array<i64: 2, 7, 16, 16>}, {pipeline_mode = #tpu.pipeline_mode<synchronous>, transform_indices = @transform_6, window_bounds = array<i64: 7, 16, 16>}, {transform_indices = @transform_7, window_bounds = array<i64: 1>}, {transform_indices = @transform_8, window_bounds = array<i64: 1, 16, 16, 64>}]} {
    %c0 = arith.constant 0 : index
    %c0_0 = arith.constant 0 : index
    %c0_1 = arith.constant 0 : index
    %0 = vector.load %arg1[%c0, %c0_0, %c0_1] : memref<1x256x256xbf16, #tpu.memory_space<vmem>>, vector<1x256x256xbf16>
    %1 = vector.shape_cast %0 : vector<1x256x256xbf16> to vector<256x256xbf16>
    %c0_2 = arith.constant 0 : index
    %c0_3 = arith.constant 0 : index
    %2 = vector.load %arg2[%c0_2, %c0_3] : memref<256x64xbf16, #tpu.memory_space<vmem>>, vector<256x64xbf16>
    %cst = arith.constant dense<0.000000e+00> : vector<256x64xf32>
    %3 = tpu.matmul %1, %2, %cst {dimension_numbers = #tpu.dot_dimension_numbers<[1], [0], [0], [1], [0, 0, 1, 1], [], []>} : vector<256x256xbf16>, vector<256x64xbf16>, vector<256x64xf32> -> vector<256x64xf32>
    %c0_4 = arith.constant 0 : index
    %c0_5 = arith.constant 0 : index
    %4 = vector.load %arg3[%c0_4, %c0_5] : memref<1x64xf32, #tpu.memory_space<vmem>>, vector<1x64xf32>
    %5 = vector.broadcast %4 : vector<1x64xf32> to vector<256x64xf32>
    %6 = arith.addf %3, %5 : vector<256x64xf32>
    %cst_6 = arith.constant dense<0.000000e+00> : vector<64xf32>
    %7 = vector.multi_reduction <add>, %6, %cst_6 [0] : vector<256x64xf32> to vector<64xf32>
    %8 = vector.shape_cast %7 : vector<64xf32> to vector<1x64xf32>
    %cst_7 = arith.constant 2.560000e+02 : f32
    %9 = vector.broadcast %cst_7 : f32 to vector<1x64xf32>
    %10 = arith.divf %8, %9 : vector<1x64xf32>
    %cst_8 = arith.constant dense<0xFF800000> : vector<64xf32>
    %11 = vector.multi_reduction <maximumf>, %6, %cst_8 [0] : vector<256x64xf32> to vector<64xf32>
    %12 = vector.shape_cast %11 : vector<64xf32> to vector<1x64xf32>
    %c0_9 = arith.constant 0 : index
    %c0_10 = arith.constant 0 : index
    %13 = vector.load %arg4[%c0_9, %c0_10] : memref<4x64xf32, #tpu.memory_space<vmem>>, vector<4x64xf32>
    %c0_11 = arith.constant 0 : index
    %c0_12 = arith.constant 0 : index
    %14 = vector.load %arg5[%c0_11, %c0_12] : memref<4x64xf32, #tpu.memory_space<vmem>>, vector<4x64xf32>
    %15 = vector.broadcast %10 : vector<1x64xf32> to vector<4x64xf32>
    %16 = arith.mulf %15, %13 : vector<4x64xf32>
    %cst_13 = arith.constant dense<0.000000e+00> : vector<4xf32>
    %17 = vector.multi_reduction <add>, %16, %cst_13 [1] : vector<4x64xf32> to vector<4xf32>
    %18 = vector.shape_cast %17 : vector<4xf32> to vector<4x1xf32>
    %cst_14 = arith.constant 0.000000e+00 : f32
    %19 = vector.broadcast %cst_14 : f32 to vector<4x1xf32>
    %20 = arith.maximumf %18, %19 : vector<4x1xf32>
    %21 = vector.broadcast %20 : vector<4x1xf32> to vector<4x64xf32>
    %22 = arith.mulf %21, %14 : vector<4x64xf32>
    %cst_15 = arith.constant dense<0.000000e+00> : vector<64xf32>
    %23 = vector.multi_reduction <add>, %22, %cst_15 [0] : vector<4x64xf32> to vector<64xf32>
    %24 = vector.shape_cast %23 : vector<64xf32> to vector<1x64xf32>
    %25 = vector.broadcast %12 : vector<1x64xf32> to vector<4x64xf32>
    %26 = arith.mulf %25, %13 : vector<4x64xf32>
    %cst_16 = arith.constant dense<0.000000e+00> : vector<4xf32>
    %27 = vector.multi_reduction <add>, %26, %cst_16 [1] : vector<4x64xf32> to vector<4xf32>
    %28 = vector.shape_cast %27 : vector<4xf32> to vector<4x1xf32>
    %cst_17 = arith.constant 0.000000e+00 : f32
    %29 = vector.broadcast %cst_17 : f32 to vector<4x1xf32>
    %30 = arith.maximumf %28, %29 : vector<4x1xf32>
    %31 = vector.broadcast %30 : vector<4x1xf32> to vector<4x64xf32>
    %32 = arith.mulf %31, %14 : vector<4x64xf32>
    %cst_18 = arith.constant dense<0.000000e+00> : vector<64xf32>
    %33 = vector.multi_reduction <add>, %32, %cst_18 [0] : vector<4x64xf32> to vector<64xf32>
    %34 = vector.shape_cast %33 : vector<64xf32> to vector<1x64xf32>
    %35 = arith.addf %24, %34 : vector<1x64xf32>
    %36 = arith.negf %35 : vector<1x64xf32>
    %37 = math.exp %36 : vector<1x64xf32>
    %cst_19 = arith.constant 1.000000e+00 : f32
    %38 = vector.broadcast %cst_19 : f32 to vector<1x64xf32>
    %39 = arith.addf %38, %37 : vector<1x64xf32>
    %40 = arith.divf %38, %39 : vector<1x64xf32>
    %41 = vector.broadcast %40 : vector<1x64xf32> to vector<256x64xf32>
    %42 = arith.mulf %6, %41 : vector<256x64xf32>
    %43 = vector.shape_cast %42 : vector<256x64xf32> to vector<16x16x64xf32>
    %cst_20 = arith.constant dense<0.000000e+00> : vector<16x16xf32>
    %44 = vector.multi_reduction <add>, %43, %cst_20 [2] : vector<16x16x64xf32> to vector<16x16xf32>
    %cst_21 = arith.constant 6.400000e+01 : f32
    %45 = vector.broadcast %cst_21 : f32 to vector<16x16xf32>
    %46 = arith.divf %44, %45 : vector<16x16xf32>
    %cst_22 = arith.constant dense<0xFF800000> : vector<16x16xf32>
    %47 = vector.multi_reduction <maximumf>, %43, %cst_22 [2] : vector<16x16x64xf32> to vector<16x16xf32>
    %cst_23 = arith.constant 0.000000e+00 : f32
    %48 = vector.broadcast %cst_23 : f32 to vector<16x16xf32>
    %c0_24 = arith.constant 0 : index
    %49 = memref.load %arg8[%c0_24] : memref<1xf32, #tpu.memory_space<smem>>
    %50 = vector.broadcast %49 : f32 to vector<16x16xf32>
    %51 = arith.addf %48, %50 : vector<16x16xf32>
    %c0_25 = arith.constant 0 : index
    %c0_26 = arith.constant 0 : index
    %c0_27 = arith.constant 0 : index
    %c0_28 = arith.constant 0 : index
    %52 = vector.load %arg6[%c0_25, %c0_26, %c0_27, %c0_28] : memref<2x7x16x16xf32, #tpu.memory_space<vmem>>, vector<1x1x16x16xf32>
    %53 = vector.shape_cast %52 : vector<1x1x16x16xf32> to vector<16x16xf32>
    %cst_29 = arith.constant dense<0.000000e+00> : vector<16x16xf32>
    %54 = tpu.matmul %46, %53, %cst_29 {dimension_numbers = #tpu.dot_dimension_numbers<[1], [0], [0], [1], [0, 0, 1, 1], [], []>} : vector<16x16xf32>, vector<16x16xf32>, vector<16x16xf32> -> vector<16x16xf32>
    %c1 = arith.constant 1 : index
    %c0_30 = arith.constant 0 : index
    %c0_31 = arith.constant 0 : index
    %c0_32 = arith.constant 0 : index
    %55 = vector.load %arg6[%c1, %c0_30, %c0_31, %c0_32] : memref<2x7x16x16xf32, #tpu.memory_space<vmem>>, vector<1x1x16x16xf32>
    %56 = vector.shape_cast %55 : vector<1x1x16x16xf32> to vector<16x16xf32>
    %cst_33 = arith.constant dense<0.000000e+00> : vector<16x16xf32>
    %57 = tpu.matmul %47, %56, %cst_33 {dimension_numbers = #tpu.dot_dimension_numbers<[1], [0], [0], [1], [0, 0, 1, 1], [], []>} : vector<16x16xf32>, vector<16x16xf32>, vector<16x16xf32> -> vector<16x16xf32>
    %58 = arith.addf %54, %57 : vector<16x16xf32>
    %c0_34 = arith.constant 0 : index
    %c0_35 = arith.constant 0 : index
    %c0_36 = arith.constant 0 : index
    %59 = vector.load %arg7[%c0_34, %c0_35, %c0_36] : memref<7x16x16xf32, #tpu.memory_space<vmem>>, vector<1x16x16xf32>
    %60 = vector.shape_cast %59 : vector<1x16x16xf32> to vector<16x16xf32>
    %cst_37 = arith.constant dense<0.000000e+00> : vector<16x16xf32>
    %61 = tpu.matmul %60, %58, %cst_37 {dimension_numbers = #tpu.dot_dimension_numbers<[1], [0], [0], [1], [0, 0, 1, 1], [], []>} : vector<16x16xf32>, vector<16x16xf32>, vector<16x16xf32> -> vector<16x16xf32>
    %62 = arith.addf %51, %61 : vector<16x16xf32>
    %c0_38 = arith.constant 0 : index
    %c1_39 = arith.constant 1 : index
    %c0_40 = arith.constant 0 : index
    %c0_41 = arith.constant 0 : index
    %63 = vector.load %arg6[%c0_38, %c1_39, %c0_40, %c0_41] : memref<2x7x16x16xf32, #tpu.memory_space<vmem>>, vector<1x1x16x16xf32>
    %64 = vector.shape_cast %63 : vector<1x1x16x16xf32> to vector<16x16xf32>
    %cst_42 = arith.constant dense<0.000000e+00> : vector<16x16xf32>
    %65 = tpu.matmul %46, %64, %cst_42 {dimension_numbers = #tpu.dot_dimension_numbers<[1], [0], [0], [1], [0, 0, 1, 1], [], []>} : vector<16x16xf32>, vector<16x16xf32>, vector<16x16xf32> -> vector<16x16xf32>
    %c1_43 = arith.constant 1 : index
    %c1_44 = arith.constant 1 : index
    %c0_45 = arith.constant 0 : index
    %c0_46 = arith.constant 0 : index
    %66 = vector.load %arg6[%c1_43, %c1_44, %c0_45, %c0_46] : memref<2x7x16x16xf32, #tpu.memory_space<vmem>>, vector<1x1x16x16xf32>
    %67 = vector.shape_cast %66 : vector<1x1x16x16xf32> to vector<16x16xf32>
    %cst_47 = arith.constant dense<0.000000e+00> : vector<16x16xf32>
    %68 = tpu.matmul %47, %67, %cst_47 {dimension_numbers = #tpu.dot_dimension_numbers<[1], [0], [0], [1], [0, 0, 1, 1], [], []>} : vector<16x16xf32>, vector<16x16xf32>, vector<16x16xf32> -> vector<16x16xf32>
    %69 = arith.addf %65, %68 : vector<16x16xf32>
    %c1_48 = arith.constant 1 : index
    %c0_49 = arith.constant 0 : index
    %c0_50 = arith.constant 0 : index
    %70 = vector.load %arg7[%c1_48, %c0_49, %c0_50] : memref<7x16x16xf32, #tpu.memory_space<vmem>>, vector<1x16x16xf32>
    %71 = vector.shape_cast %70 : vector<1x16x16xf32> to vector<16x16xf32>
    %cst_51 = arith.constant dense<0.000000e+00> : vector<16x16xf32>
    %72 = tpu.matmul %71, %69, %cst_51 {dimension_numbers = #tpu.dot_dimension_numbers<[1], [0], [0], [1], [0, 0, 1, 1], [], []>} : vector<16x16xf32>, vector<16x16xf32>, vector<16x16xf32> -> vector<16x16xf32>
    %73 = arith.addf %62, %72 : vector<16x16xf32>
    %c0_52 = arith.constant 0 : index
    %c2 = arith.constant 2 : index
    %c0_53 = arith.constant 0 : index
    %c0_54 = arith.constant 0 : index
    %74 = vector.load %arg6[%c0_52, %c2, %c0_53, %c0_54] : memref<2x7x16x16xf32, #tpu.memory_space<vmem>>, vector<1x1x16x16xf32>
    %75 = vector.shape_cast %74 : vector<1x1x16x16xf32> to vector<16x16xf32>
    %cst_55 = arith.constant dense<0.000000e+00> : vector<16x16xf32>
    %76 = tpu.matmul %46, %75, %cst_55 {dimension_numbers = #tpu.dot_dimension_numbers<[1], [0], [0], [1], [0, 0, 1, 1], [], []>} : vector<16x16xf32>, vector<16x16xf32>, vector<16x16xf32> -> vector<16x16xf32>
    %c1_56 = arith.constant 1 : index
    %c2_57 = arith.constant 2 : index
    %c0_58 = arith.constant 0 : index
    %c0_59 = arith.constant 0 : index
    %77 = vector.load %arg6[%c1_56, %c2_57, %c0_58, %c0_59] : memref<2x7x16x16xf32, #tpu.memory_space<vmem>>, vector<1x1x16x16xf32>
    %78 = vector.shape_cast %77 : vector<1x1x16x16xf32> to vector<16x16xf32>
    %cst_60 = arith.constant dense<0.000000e+00> : vector<16x16xf32>
    %79 = tpu.matmul %47, %78, %cst_60 {dimension_numbers = #tpu.dot_dimension_numbers<[1], [0], [0], [1], [0, 0, 1, 1], [], []>} : vector<16x16xf32>, vector<16x16xf32>, vector<16x16xf32> -> vector<16x16xf32>
    %80 = arith.addf %76, %79 : vector<16x16xf32>
    %c2_61 = arith.constant 2 : index
    %c0_62 = arith.constant 0 : index
    %c0_63 = arith.constant 0 : index
    %81 = vector.load %arg7[%c2_61, %c0_62, %c0_63] : memref<7x16x16xf32, #tpu.memory_space<vmem>>, vector<1x16x16xf32>
    %82 = vector.shape_cast %81 : vector<1x16x16xf32> to vector<16x16xf32>
    %cst_64 = arith.constant dense<0.000000e+00> : vector<16x16xf32>
    %83 = tpu.matmul %82, %80, %cst_64 {dimension_numbers = #tpu.dot_dimension_numbers<[1], [0], [0], [1], [0, 0, 1, 1], [], []>} : vector<16x16xf32>, vector<16x16xf32>, vector<16x16xf32> -> vector<16x16xf32>
    %84 = arith.addf %73, %83 : vector<16x16xf32>
    %c0_65 = arith.constant 0 : index
    %c3 = arith.constant 3 : index
    %c0_66 = arith.constant 0 : index
    %c0_67 = arith.constant 0 : index
    %85 = vector.load %arg6[%c0_65, %c3, %c0_66, %c0_67] : memref<2x7x16x16xf32, #tpu.memory_space<vmem>>, vector<1x1x16x16xf32>
    %86 = vector.shape_cast %85 : vector<1x1x16x16xf32> to vector<16x16xf32>
    %cst_68 = arith.constant dense<0.000000e+00> : vector<16x16xf32>
    %87 = tpu.matmul %46, %86, %cst_68 {dimension_numbers = #tpu.dot_dimension_numbers<[1], [0], [0], [1], [0, 0, 1, 1], [], []>} : vector<16x16xf32>, vector<16x16xf32>, vector<16x16xf32> -> vector<16x16xf32>
    %c1_69 = arith.constant 1 : index
    %c3_70 = arith.constant 3 : index
    %c0_71 = arith.constant 0 : index
    %c0_72 = arith.constant 0 : index
    %88 = vector.load %arg6[%c1_69, %c3_70, %c0_71, %c0_72] : memref<2x7x16x16xf32, #tpu.memory_space<vmem>>, vector<1x1x16x16xf32>
    %89 = vector.shape_cast %88 : vector<1x1x16x16xf32> to vector<16x16xf32>
    %cst_73 = arith.constant dense<0.000000e+00> : vector<16x16xf32>
    %90 = tpu.matmul %47, %89, %cst_73 {dimension_numbers = #tpu.dot_dimension_numbers<[1], [0], [0], [1], [0, 0, 1, 1], [], []>} : vector<16x16xf32>, vector<16x16xf32>, vector<16x16xf32> -> vector<16x16xf32>
    %91 = arith.addf %87, %90 : vector<16x16xf32>
    %c3_74 = arith.constant 3 : index
    %c0_75 = arith.constant 0 : index
    %c0_76 = arith.constant 0 : index
    %92 = vector.load %arg7[%c3_74, %c0_75, %c0_76] : memref<7x16x16xf32, #tpu.memory_space<vmem>>, vector<1x16x16xf32>
    %93 = vector.shape_cast %92 : vector<1x16x16xf32> to vector<16x16xf32>
    %cst_77 = arith.constant dense<0.000000e+00> : vector<16x16xf32>
    %94 = tpu.matmul %93, %91, %cst_77 {dimension_numbers = #tpu.dot_dimension_numbers<[1], [0], [0], [1], [0, 0, 1, 1], [], []>} : vector<16x16xf32>, vector<16x16xf32>, vector<16x16xf32> -> vector<16x16xf32>
    %95 = arith.addf %84, %94 : vector<16x16xf32>
    %c0_78 = arith.constant 0 : index
    %c4 = arith.constant 4 : index
    %c0_79 = arith.constant 0 : index
    %c0_80 = arith.constant 0 : index
    %96 = vector.load %arg6[%c0_78, %c4, %c0_79, %c0_80] : memref<2x7x16x16xf32, #tpu.memory_space<vmem>>, vector<1x1x16x16xf32>
    %97 = vector.shape_cast %96 : vector<1x1x16x16xf32> to vector<16x16xf32>
    %cst_81 = arith.constant dense<0.000000e+00> : vector<16x16xf32>
    %98 = tpu.matmul %46, %97, %cst_81 {dimension_numbers = #tpu.dot_dimension_numbers<[1], [0], [0], [1], [0, 0, 1, 1], [], []>} : vector<16x16xf32>, vector<16x16xf32>, vector<16x16xf32> -> vector<16x16xf32>
    %c1_82 = arith.constant 1 : index
    %c4_83 = arith.constant 4 : index
    %c0_84 = arith.constant 0 : index
    %c0_85 = arith.constant 0 : index
    %99 = vector.load %arg6[%c1_82, %c4_83, %c0_84, %c0_85] : memref<2x7x16x16xf32, #tpu.memory_space<vmem>>, vector<1x1x16x16xf32>
    %100 = vector.shape_cast %99 : vector<1x1x16x16xf32> to vector<16x16xf32>
    %cst_86 = arith.constant dense<0.000000e+00> : vector<16x16xf32>
    %101 = tpu.matmul %47, %100, %cst_86 {dimension_numbers = #tpu.dot_dimension_numbers<[1], [0], [0], [1], [0, 0, 1, 1], [], []>} : vector<16x16xf32>, vector<16x16xf32>, vector<16x16xf32> -> vector<16x16xf32>
    %102 = arith.addf %98, %101 : vector<16x16xf32>
    %c4_87 = arith.constant 4 : index
    %c0_88 = arith.constant 0 : index
    %c0_89 = arith.constant 0 : index
    %103 = vector.load %arg7[%c4_87, %c0_88, %c0_89] : memref<7x16x16xf32, #tpu.memory_space<vmem>>, vector<1x16x16xf32>
    %104 = vector.shape_cast %103 : vector<1x16x16xf32> to vector<16x16xf32>
    %cst_90 = arith.constant dense<0.000000e+00> : vector<16x16xf32>
    %105 = tpu.matmul %104, %102, %cst_90 {dimension_numbers = #tpu.dot_dimension_numbers<[1], [0], [0], [1], [0, 0, 1, 1], [], []>} : vector<16x16xf32>, vector<16x16xf32>, vector<16x16xf32> -> vector<16x16xf32>
    %106 = arith.addf %95, %105 : vector<16x16xf32>
    %c0_91 = arith.constant 0 : index
    %c5 = arith.constant 5 : index
    %c0_92 = arith.constant 0 : index
    %c0_93 = arith.constant 0 : index
    %107 = vector.load %arg6[%c0_91, %c5, %c0_92, %c0_93] : memref<2x7x16x16xf32, #tpu.memory_space<vmem>>, vector<1x1x16x16xf32>
    %108 = vector.shape_cast %107 : vector<1x1x16x16xf32> to vector<16x16xf32>
    %cst_94 = arith.constant dense<0.000000e+00> : vector<16x16xf32>
    %109 = tpu.matmul %46, %108, %cst_94 {dimension_numbers = #tpu.dot_dimension_numbers<[1], [0], [0], [1], [0, 0, 1, 1], [], []>} : vector<16x16xf32>, vector<16x16xf32>, vector<16x16xf32> -> vector<16x16xf32>
    %c1_95 = arith.constant 1 : index
    %c5_96 = arith.constant 5 : index
    %c0_97 = arith.constant 0 : index
    %c0_98 = arith.constant 0 : index
    %110 = vector.load %arg6[%c1_95, %c5_96, %c0_97, %c0_98] : memref<2x7x16x16xf32, #tpu.memory_space<vmem>>, vector<1x1x16x16xf32>
    %111 = vector.shape_cast %110 : vector<1x1x16x16xf32> to vector<16x16xf32>
    %cst_99 = arith.constant dense<0.000000e+00> : vector<16x16xf32>
    %112 = tpu.matmul %47, %111, %cst_99 {dimension_numbers = #tpu.dot_dimension_numbers<[1], [0], [0], [1], [0, 0, 1, 1], [], []>} : vector<16x16xf32>, vector<16x16xf32>, vector<16x16xf32> -> vector<16x16xf32>
    %113 = arith.addf %109, %112 : vector<16x16xf32>
    %c5_100 = arith.constant 5 : index
    %c0_101 = arith.constant 0 : index
    %c0_102 = arith.constant 0 : index
    %114 = vector.load %arg7[%c5_100, %c0_101, %c0_102] : memref<7x16x16xf32, #tpu.memory_space<vmem>>, vector<1x16x16xf32>
    %115 = vector.shape_cast %114 : vector<1x16x16xf32> to vector<16x16xf32>
    %cst_103 = arith.constant dense<0.000000e+00> : vector<16x16xf32>
    %116 = tpu.matmul %115, %113, %cst_103 {dimension_numbers = #tpu.dot_dimension_numbers<[1], [0], [0], [1], [0, 0, 1, 1], [], []>} : vector<16x16xf32>, vector<16x16xf32>, vector<16x16xf32> -> vector<16x16xf32>
    %117 = arith.addf %106, %116 : vector<16x16xf32>
    %c0_104 = arith.constant 0 : index
    %c6 = arith.constant 6 : index
    %c0_105 = arith.constant 0 : index
    %c0_106 = arith.constant 0 : index
    %118 = vector.load %arg6[%c0_104, %c6, %c0_105, %c0_106] : memref<2x7x16x16xf32, #tpu.memory_space<vmem>>, vector<1x1x16x16xf32>
    %119 = vector.shape_cast %118 : vector<1x1x16x16xf32> to vector<16x16xf32>
    %cst_107 = arith.constant dense<0.000000e+00> : vector<16x16xf32>
    %120 = tpu.matmul %46, %119, %cst_107 {dimension_numbers = #tpu.dot_dimension_numbers<[1], [0], [0], [1], [0, 0, 1, 1], [], []>} : vector<16x16xf32>, vector<16x16xf32>, vector<16x16xf32> -> vector<16x16xf32>
    %c1_108 = arith.constant 1 : index
    %c6_109 = arith.constant 6 : index
    %c0_110 = arith.constant 0 : index
    %c0_111 = arith.constant 0 : index
    %121 = vector.load %arg6[%c1_108, %c6_109, %c0_110, %c0_111] : memref<2x7x16x16xf32, #tpu.memory_space<vmem>>, vector<1x1x16x16xf32>
    %122 = vector.shape_cast %121 : vector<1x1x16x16xf32> to vector<16x16xf32>
    %cst_112 = arith.constant dense<0.000000e+00> : vector<16x16xf32>
    %123 = tpu.matmul %47, %122, %cst_112 {dimension_numbers = #tpu.dot_dimension_numbers<[1], [0], [0], [1], [0, 0, 1, 1], [], []>} : vector<16x16xf32>, vector<16x16xf32>, vector<16x16xf32> -> vector<16x16xf32>
    %124 = arith.addf %120, %123 : vector<16x16xf32>
    %c6_113 = arith.constant 6 : index
    %c0_114 = arith.constant 0 : index
    %c0_115 = arith.constant 0 : index
    %125 = vector.load %arg7[%c6_113, %c0_114, %c0_115] : memref<7x16x16xf32, #tpu.memory_space<vmem>>, vector<1x16x16xf32>
    %126 = vector.shape_cast %125 : vector<1x16x16xf32> to vector<16x16xf32>
    %cst_116 = arith.constant dense<0.000000e+00> : vector<16x16xf32>
    %127 = tpu.matmul %126, %124, %cst_116 {dimension_numbers = #tpu.dot_dimension_numbers<[1], [0], [0], [1], [0, 0, 1, 1], [], []>} : vector<16x16xf32>, vector<16x16xf32>, vector<16x16xf32> -> vector<16x16xf32>
    %128 = arith.addf %117, %127 : vector<16x16xf32>
    %129 = arith.negf %128 : vector<16x16xf32>
    %130 = math.exp %129 : vector<16x16xf32>
    %cst_117 = arith.constant 1.000000e+00 : f32
    %131 = vector.broadcast %cst_117 : f32 to vector<16x16xf32>
    %132 = arith.addf %131, %130 : vector<16x16xf32>
    %133 = arith.divf %131, %132 : vector<16x16xf32>
    %134 = vector.shape_cast %133 : vector<16x16xf32> to vector<16x16x1xf32>
    %135 = vector.broadcast %134 : vector<16x16x1xf32> to vector<16x16x64xf32>
    %136 = arith.mulf %43, %135 : vector<16x16x64xf32>
    %137 = vector.shape_cast %6 : vector<256x64xf32> to vector<16x16x64xf32>
    %138 = arith.addf %136, %137 : vector<16x16x64xf32>
    %139 = vector.shape_cast %138 : vector<16x16x64xf32> to vector<1x16x16x64xf32>
    %c0_118 = arith.constant 0 : index
    %c0_119 = arith.constant 0 : index
    %c0_120 = arith.constant 0 : index
    %c0_121 = arith.constant 0 : index
    %140 = vector.load %arg9[%c0_118, %c0_119, %c0_120, %c0_121] : memref<1x16x16x64xf32, #tpu.memory_space<vmem>>, vector<1x16x16x64xf32>
    tpu.vector_store %arg9[%c0_118, %c0_119, %c0_120, %c0_121], %139 {strides = array<i32>} : memref<1x16x16x64xf32, #tpu.memory_space<vmem>>, vector<1x16x16x64xf32>,
    return
  }
  func.func @transform_0(%arg0: i32) -> (i32, i32, i32) {
    %c0_i32 = arith.constant 0 : i32
    %c0_i32_0 = arith.constant 0 : i32
    %c0_i32_1 = arith.constant 0 : i32
    return %arg0, %c0_i32, %c0_i32_0 : i32, i32, i32
  }
  func.func @transform_1(%arg0: i32) -> (i32, i32) {
    %c0_i32 = arith.constant 0 : i32
    %c0_i32_0 = arith.constant 0 : i32
    %c0_i32_1 = arith.constant 0 : i32
    return %c0_i32, %c0_i32_0 : i32, i32
  }
  func.func @transform_2(%arg0: i32) -> (i32, i32) {
    %c0_i32 = arith.constant 0 : i32
    %c0_i32_0 = arith.constant 0 : i32
    %c0_i32_1 = arith.constant 0 : i32
    return %c0_i32, %c0_i32_0 : i32, i32
  }
  func.func @transform_3(%arg0: i32) -> (i32, i32) {
    %c0_i32 = arith.constant 0 : i32
    %c0_i32_0 = arith.constant 0 : i32
    %c0_i32_1 = arith.constant 0 : i32
    return %c0_i32, %c0_i32_0 : i32, i32
  }
  func.func @transform_4(%arg0: i32) -> (i32, i32) {
    %c0_i32 = arith.constant 0 : i32
    %c0_i32_0 = arith.constant 0 : i32
    %c0_i32_1 = arith.constant 0 : i32
    return %c0_i32, %c0_i32_0 : i32, i32
  }
  func.func @transform_5(%arg0: i32) -> (i32, i32, i32, i32) {
    %c0_i32 = arith.constant 0 : i32
    %c0_i32_0 = arith.constant 0 : i32
    %c0_i32_1 = arith.constant 0 : i32
    %c0_i32_2 = arith.constant 0 : i32
    %c0_i32_3 = arith.constant 0 : i32
    return %c0_i32, %c0_i32_0, %c0_i32_1, %c0_i32_2 : i32, i32, i32, i32
  }
  func.func @transform_6(%arg0: i32) -> (i32, i32, i32) {
    %c0_i32 = arith.constant 0 : i32
    %c0_i32_0 = arith.constant 0 : i32
    %c0_i32_1 = arith.constant 0 : i32
    %c0_i32_2 = arith.constant 0 : i32
    return %c0_i32, %c0_i32_0, %c0_i32_1 : i32, i32, i32
  }
  func.func @transform_7(%arg0: i32) -> i32 {
    %c0_i32 = arith.constant 0 : i32
    %c0_i32_0 = arith.constant 0 : i32
    return %c0_i32 : i32
  }
  func.func @transform_8(%arg0: i32) -> (i32, i32, i32, i32) {
    %c0_i32 = arith.constant 0 : i32
    %c0_i32_0 = arith.constant 0 : i32
    %c0_i32_1 = arith.constant 0 : i32
    %c0_i32_2 = arith.constant 0 : i32
    return %arg0, %c0_i32, %c0_i32_0, %c0_i32_1 : i32, i32, i32, i32
  }
}

</mosaic_0001>

<bundles_post_ra>
// kernel: down_sampling_connection_block.1
= control target key start
LH: loop header
LB: loop body
LE: loop exit
PB: predicated region body
PF: predicated region fallthrough
CT: control target
= control target key end

     0   :  { %s4407_s0 = inlined_call_operand.vmem [shape: bf16[2,256,256], index: 0, kind: input, shape index: {}]   ;;  %s4408_s1 = inlined_call_operand.vmem [shape: bf16[256,64], index: 1, kind: input, shape index: {}]   ;;  %s4409_s2 = inlined_call_operand.vmem [shape: f32[1,64], index: 2, kind: input, shape index: {}]   ;;  %s4410_s3 = inlined_call_operand.vmem [shape: f32[4,64], index: 3, kind: input, shape index: {}]   ;;  %s4411_s4 = inlined_call_operand.vmem [shape: f32[4,64], index: 4, kind: input, shape index: {}]   ;;  %s4412_s5 = inlined_call_operand.vmem [shape: f32[2,7,16,16], index: 5, kind: input, shape index: {}]   ;;  %s4413_s6 = inlined_call_operand.vmem [shape: f32[7,16,16], index: 6, kind: input, shape index: {}]   ;;  %s4414_s7 = inlined_call_operand.<no memory space> [shape: f32[1], index: 7, kind: input, shape index: {}]   ;;  %s4415_s8 = inlined_call_operand.hbm [shape: f32[2,16,16,64], index: 8, kind: output, shape index: {}]  }
   0x1   :  { %13 = sst [smem:[#allocation2]] %s4414_s7 }
   0x2   :  { %14 = vsyncpa [#allocation4], 0 }
   0x3   :  { %16 = vsyncpa [#allocation4 + $0x1], 0  ;;  %s3046_s29 = smov 0   ;;  %s3048_s30 = smov 0  }
   0x4   :  { %s3050_s9 = smov 0   ;;  %s3052_s10 = smov 0  }
   0x5 LB: > { %s3067_s7 = sadd.s32 4294967295, %s2992_s10   ;;  %s2497_s11 = sadd.s32 4294967294, %s2992_s10   ;;  %s2992_s10 = sphi %s3052_s10, %s4543_s10   ;;  %s2988_s9 = sphi %s3050_s9, %s4542_s9   ;;  %s2984_s30 = sphi %s3048_s30, %s4541_s30   ;;  %s2980_s29 = sphi %s3046_s29, %s4540_s29  }
   0x6   : > { %s3071_s12 = sadd.s32 1, %s2992_s10   ;;  %s202_s13 = sadd.s32 1, %s2988_s9 }
   0x7   : > { %s199_s14 = ssub.s32 %s2992_s10, %s3071_s12  ;;  %p212_p0 = scmp.ne.s32.totalorder %s2988_s9, %s2984_s30 }
   0x8   : > { %p200_p1 = scmp.eq.s32.totalorder %s199_s14, 0  ;;  %p213_p2 = scmp.eq.s32.totalorder %s3067_s7, 1 }
   0x9   : > { %p218_p3 = scmp.ne.s32.totalorder %s2984_s30, %s2980_s29  ;;  %p219_p4 = scmp.eq.s32.totalorder %s2497_s11, 1 }
   0xa   : > { %s3082_s15 = scalar_select %p200_p1, %s2988_s9, %s202_s13  }
   0xb   : > { %p3084_p5 = por %p213_p2, %p212_p0  ;;  %p3088_p6 = por %p219_p4, %p218_p3 }
   0xc   : > { %p2500_p7 = scmp.ge.s32.totalorder %s2992_s10, 1  ;;  %p266_p8 = scmp.lt.s32.totalorder %s2992_s10, 3 }
   0xe   : > { %p267_p9 = pnand %p2500_p7, %p266_p8 }
  0x10   : > { %270 = sbr.rel (%p267_p9) target bundleno = 2419 (0x973), region = 52 }
  0x15   : > { %v2824_v0 = vld [vmem:[%s4408_s1 + $0x38] sm:$0xff]  ;;  %v2823_v2 = vld [vmem:[%s4408_s1 + $0x30] sm:$0xff]  ;;  %v2822_v4 = vld [vmem:[%s4408_s1 + $0x28] sm:$0xff]  ;;  %p300_p10 = scmp.lt.s32.totalorder %s3067_s7, 1  ;;  %vm807_vm0 = vcmask 523264   ;;  %vm957_vm2 = vcmask 519168  }
  0x16   : > { %v2832_v1 = vld [vmem:[%s4408_s1 + $0x78] sm:$0xff]  ;;  %629 = vmatpush.bf16.msra.mxu0 %v2824_v0  ;;  %v2831_v3 = vld [vmem:[%s4408_s1 + $0x70] sm:$0xff]  ;;  %2834 = vmatpush.bf16.msra.mxu3 %v2824_v0  ;;  %v2830_v5 = vld [vmem:[%s4408_s1 + $0x68] sm:$0xff]  ;;  %vm1311_vm7 = vcmask 130112   ;;  %vm1358_vm8 = vcmask 1041409   ;;  %vm1360_vm10 = vcmask 1042434  }
  0x17   : > { %718 = vmatpush.bf16.msra.mxu1 %v2832_v1  ;;  %2842 = vmatpush.bf16.msra.mxu2 %v2832_v1  ;;  %v2821_v6 = vld [vmem:[%s4408_s1 + $0x20] sm:$0xff]  ;;  %v2820_v8 = vld [vmem:[%s4408_s1 + $0x18] sm:$0xff]  ;;  %s301_s24 = scalar_select %p300_p10, %s3067_s7, 1  ;;  %v2819_v10 = vld [vmem:[%s4408_s1 + $0x10] sm:$0xff]  ;;  %vm1362_vm11 = vcmask 1043459   ;;  %vm1364_vm12 = vcmask 1044484  }
  0x18   : > { %v2829_v7 = vld [vmem:[%s4408_s1 + $0x60] sm:$0xff]  ;;  %v2828_v9 = vld [vmem:[%s4408_s1 + $0x58] sm:$0xff]  ;;  %v2827_v11 = vld [vmem:[%s4408_s1 + $0x50] sm:$0xff]  ;;  %vm1366_vm13 = vcmask 1045509   ;;  %vm1368_vm14 = vcmask 1046534   ;;  %vm1370_vm15 = vcmask 1047559  }
  0x19   : > { %s2784_s11 = sshll.u32 %s301_s24, 8  ;;  %v2818_v12 = vld [vmem:[%s4408_s1 + $0x8] sm:$0xff]  ;;  %v2817_v14 = vld [vmem:[%s4408_s1] sm:$0xff]  ;;  %s1266_s27 = sld [smem:[#allocation2]] }
  0x1a   : > { %630 = vmatpush.bf16.msra.mxu0 %v2823_v2  ;;  %2835 = vmatpush.bf16.msra.mxu3 %v2823_v2  ;;  %v2826_v13 = vld [vmem:[%s4408_s1 + $0x48] sm:$0xff]  ;;  %s3141_s22 = scalar_lea.vmem %s4407_s0, %s2784_s11  ;;  %v2825_v15 = vld [vmem:[%s4408_s1 + $0x40] sm:$0xff]  ;;  %s297_s20 = sand.u32 1, %s2984_s30  }
  0x1b   : > { %719 = vmatpush.bf16.msra.mxu1 %v2831_v3  ;;  %2843 = vmatpush.bf16.msra.mxu2 %v2831_v3  ;;  %v2506_v16 = vld [vmem:[%s3141_s22] sm:$0xf]  ;;  %v2786_v17 = vld [vmem:[%s3141_s22 + $0x4] sm:$0xf0]  ;;  %v2785_v18 = vld [vmem:[%s3141_s22 + $0x4] sm:$0xf] }
  0x1c   : > { %v2508_v19 = vld [vmem:[%s3141_s22 + $0x8] sm:$0xf0]  ;;  %v2507_v20 = vor.u32 %v2786_v17, %v2506_v16  ;;  %v2514_v22 = vld [vmem:[%s3141_s22 + $0x10] sm:$0xf]  ;;  %v2788_v23 = vld [vmem:[%s3141_s22 + $0x14] sm:$0xf0] }
  0x1d   : > { %v2511_v21 = vor.u32 %v2785_v18, %v2508_v19  ;;  %v2787_v24 = vld [vmem:[%s3141_s22 + $0x14] sm:$0xf]  ;;  %v2516_v25 = vld [vmem:[%s3141_s22 + $0x18] sm:$0xf0]  ;;  %v2515_v26 = vor.u32 %v2788_v23, %v2514_v22  ;;  %v2522_v28 = vld [vmem:[%s3141_s22 + $0x20] sm:$0xf] }
  0x1e   : > { %631 = vmatpush.bf16.msra.mxu0 %v2822_v4  ;;  %2836 = vmatpush.bf16.msra.mxu3 %v2822_v4  ;;  %v2519_v27 = vor.u32 %v2787_v24, %v2516_v25  ;;  %v2790_v29 = vld [vmem:[%s3141_s22 + $0x24] sm:$0xf0]  ;;  %v2789_v30 = vld [vmem:[%s3141_s22 + $0x24] sm:$0xf]  ;;  %v2524_v31 = vld [vmem:[%s3141_s22 + $0x28] sm:$0xf0] }
  0x1f   : > { %720 = vmatpush.bf16.msra.mxu1 %v2830_v5  ;;  %2844 = vmatpush.bf16.msra.mxu2 %v2830_v5  ;;  %v2523_v32 = vor.u32 %v2790_v29, %v2522_v28  ;;  %v2527_v33 = vor.u32 %v2789_v30, %v2524_v31  ;;  %v2530_v34 = vld [vmem:[%s3141_s22 + $0x30] sm:$0xf]  ;;  %v2792_v35 = vld [vmem:[%s3141_s22 + $0x34] sm:$0xf0]  ;;  %v2791_v36 = vld [vmem:[%s3141_s22 + $0x34] sm:$0xf] }
  0x20   : > { %v2532_v37 = vld [vmem:[%s3141_s22 + $0x38] sm:$0xf0]  ;;  %v2531_v38 = vor.u32 %v2792_v35, %v2530_v34  ;;  %v2538_v40 = vld [vmem:[%s3141_s22 + $0x40] sm:$0xf]  ;;  %v2794_v41 = vld [vmem:[%s3141_s22 + $0x44] sm:$0xf0] }
  0x21   : > { %v2535_v39 = vor.u32 %v2791_v36, %v2532_v37  ;;  %v2793_v42 = vld [vmem:[%s3141_s22 + $0x44] sm:$0xf]  ;;  %v2540_v43 = vld [vmem:[%s3141_s22 + $0x48] sm:$0xf0]  ;;  %v2539_v44 = vor.u32 %v2794_v41, %v2538_v40  ;;  %v2546_v46 = vld [vmem:[%s3141_s22 + $0x50] sm:$0xf] }
  0x22   : > { %632 = vmatpush.bf16.msra.mxu0 %v2821_v6  ;;  %2837 = vmatpush.bf16.msra.mxu3 %v2821_v6  ;;  %v2543_v45 = vor.u32 %v2793_v42, %v2540_v43  ;;  %v2796_v47 = vld [vmem:[%s3141_s22 + $0x54] sm:$0xf0]  ;;  %v2795_v48 = vld [vmem:[%s3141_s22 + $0x54] sm:$0xf]  ;;  %v2548_v49 = vld [vmem:[%s3141_s22 + $0x58] sm:$0xf0] }
  0x23   : > { %721 = vmatpush.bf16.msra.mxu1 %v2829_v7  ;;  %2845 = vmatpush.bf16.msra.mxu2 %v2829_v7  ;;  %v2547_v50 = vor.u32 %v2796_v47, %v2546_v46  ;;  %v2551_v51 = vor.u32 %v2795_v48, %v2548_v49  ;;  %v2554_v52 = vld [vmem:[%s3141_s22 + $0x60] sm:$0xf]  ;;  %v2798_v53 = vld [vmem:[%s3141_s22 + $0x64] sm:$0xf0]  ;;  %v2797_v54 = vld [vmem:[%s3141_s22 + $0x64] sm:$0xf] }
  0x24   : > { %v2556_v55 = vld [vmem:[%s3141_s22 + $0x68] sm:$0xf0]  ;;  %v2555_v56 = vor.u32 %v2798_v53, %v2554_v52  ;;  %v2562_v58 = vld [vmem:[%s3141_s22 + $0x70] sm:$0xf]  ;;  %v2800_v59 = vld [vmem:[%s3141_s22 + $0x74] sm:$0xf0] }
  0x25   : > { %v2559_v57 = vor.u32 %v2797_v54, %v2556_v55  ;;  %v2799_v60 = vld [vmem:[%s3141_s22 + $0x74] sm:$0xf]  ;;  %v2564_v61 = vld [vmem:[%s3141_s22 + $0x78] sm:$0xf0]  ;;  %v2563_v62 = vor.u32 %v2800_v59, %v2562_v58  ;;  %v2570_v0 = vld [vmem:[%s3141_s22 + $0x80] sm:$0xf] }
  0x26   : > { %633 = vmatpush.bf16.msra.mxu0 %v2820_v8  ;;  %2838 = vmatpush.bf16.msra.mxu3 %v2820_v8  ;;  %v2567_v63 = vor.u32 %v2799_v60, %v2564_v61  ;;  %v2802_v1 = vld [vmem:[%s3141_s22 + $0x84] sm:$0xf0]  ;;  %v2801_v2 = vld [vmem:[%s3141_s22 + $0x84] sm:$0xf]  ;;  %v2572_v3 = vld [vmem:[%s3141_s22 + $0x88] sm:$0xf0] }
  0x27   : > { %722 = vmatpush.bf16.msra.mxu1 %v2828_v9  ;;  %2846 = vmatpush.bf16.msra.mxu2 %v2828_v9  ;;  %v3188_v4 = vld [vmem:[%s4409_s2] ss:$0 sm:$0xff]  ;;  %v2571_v5 = vor.u32 %v2802_v1, %v2570_v0  ;;  %v2575_v6 = vor.u32 %v2801_v2, %v2572_v3  ;;  %v2578_v18 = vld [vmem:[%s3141_s22 + $0x90] sm:$0xf]  ;;  %v2804_v19 = vld [vmem:[%s3141_s22 + $0x94] sm:$0xf0] }
  0x28   : > { %v2579_v22 = vor.u32 %v2804_v19, %v2578_v18  ;;  %v2814_v28 = vld [vmem:[%s3141_s22 + $0xe4] sm:$0xf0]  ;;  %v2813_v31 = vld [vmem:[%s3141_s22 + $0xe4] sm:$0xf]  ;;  %v2588_v41 = vld [vmem:[%s3141_s22 + $0xa8] sm:$0xf0] }
  0x29   : > { %v2805_v40 = vld [vmem:[%s3141_s22 + $0xa4] sm:$0xf]  ;;  %v2626_v47 = vld [vmem:[%s3141_s22 + $0xf0] sm:$0xf]  ;;  %v2816_v48 = vld [vmem:[%s3141_s22 + $0xf4] sm:$0xf0] }
  0x2a   : > { %634 = vmatpush.bf16.msra.mxu0 %v2819_v10  ;;  %2839 = vmatpush.bf16.msra.mxu3 %v2819_v10  ;;  %v2610_v10 = vld [vmem:[%s3141_s22 + $0xd0] sm:$0xf]  ;;  %v2591_v43 = vor.u32 %v2805_v40, %v2588_v41  ;;  %v2628_v52 = vld [vmem:[%s3141_s22 + $0xf8] sm:$0xf0]  ;;  %v2808_v59 = vld [vmem:[%s3141_s22 + $0xb4] sm:$0xf0] }
  0x2b   : > { %723 = vmatpush.bf16.msra.mxu1 %v2827_v11  ;;  %2847 = vmatpush.bf16.msra.mxu2 %v2827_v11  ;;  %v2812_v11 = vld [vmem:[%s3141_s22 + $0xd4] sm:$0xf0]  ;;  %v2594_v58 = vld [vmem:[%s3141_s22 + $0xb0] sm:$0xf]  ;;  %v2807_v60 = vld [vmem:[%s3141_s22 + $0xb4] sm:$0xf] }
  0x2c   : > { %v2596_v61 = vld [vmem:[%s3141_s22 + $0xb8] sm:$0xf0]  ;;  %s2501_s21 = sshll.u32 %s297_s20, 8  ;;  %s2833_s23 = sshll.u32 %s3067_s7, 8 }
  0x2d   : > { %s2431_s26 = scalar_lea.hbm %s4415_s8, %s2833_s23  ;;  %s2420_s7 = scalar_lea.sflag [#allocation4], %s297_s20 }
  0x2e   : > { %635 = vmatpush.bf16.msra.mxu0 %v2818_v12  ;;  %2840 = vmatpush.bf16.msra.mxu3 %v2818_v12  ;;  %s2434_s28 = sshll.u32 %s2431_s26, 4  ;;  %s2950_s19 = scalar_lea.hbm %s4415_s8, 512  ;;  %s2435_s28 = int_to_ptr.hbm [resolvable:$true] %s2434_s28 }
  0x2f   : > { %724 = vmatpush.bf16.msra.mxu1 %v2826_v13  ;;  %2848 = vmatpush.bf16.msra.mxu2 %v2826_v13  ;;  %v2611_v13 = vor.u32 %v2812_v11, %v2610_v10  ;;  %v2810_v10 = vld [vmem:[%s3141_s22 + $0xc4] sm:$0xf0]  ;;  %v2809_v11 = vld [vmem:[%s3141_s22 + $0xc4] sm:$0xf]  ;;  %s2944_s11 = sshra.s32 %s2435_s28, 4  ;;  %s2945_s11 = int_to_ptr.hbm [resolvable:$true] %s2944_s11 }
  0x30   : > { %s2946_s13 = scalar_lea.hbm %s2945_s11, 256  ;;  %p2951_p0 = scmp.lt.s32.totalorder %s2945_s11, %s4415_s8 }
  0x31   : > { %p2947_p11 = scmp.ne.s32.totalorder %s2945_s11, %s2946_s13  ;;  %p2952_p1 = scmp.lt.s32.totalorder %s2950_s19, %s2946_s13 }
  0x32   : > { %636 = vmatpush.bf16.msra.mxu0 %v2817_v14  ;;  %2841 = vmatpush.bf16.msra.mxu3 %v2817_v14 }
  0x33   : > { %725 = vmatpush.bf16.msra.mxu1 %v2825_v15  ;;  %2849 = vmatpush.bf16.msra.mxu2 %v2825_v15  ;;  %p2948_p12 = pnand %p2947_p11, %p3084_p5  ;;  %p2953_p2 = por %p2952_p1, %p2951_p0 }
  0x35   : > { %637 = vmatmul.bf16.vlgmr.msra.gmra.mxu0 %v2507_v20  ;;  %702 = vmatmul.bf16.vlgmr.msra.gmra.mxu3 %v2611_v13  ;;  %v2803_v20 = vld [vmem:[%s3141_s22 + $0x94] sm:$0xf]  ;;  %v2604_v13 = vld [vmem:[%s3141_s22 + $0xc8] sm:$0xf0]  ;;  %p2949_p13 = pneg %p2948_p12 }
  0x36   : > { %726 = vmatmul.bf16.vlgmr.msra.gmra.mxu1 %v2511_v21  ;;  %v2580_v21 = vld [vmem:[%s3141_s22 + $0x98] sm:$0xf0] }
  0x37   : > { %v2583_v23 = vor.u32 %v2803_v20, %v2580_v21  ;;  %p2954_p3 = pnand %p2953_p2, %p2949_p13 }
  0x45   : > { %642 = vmatmul.bf16.gmra.mxu0 %v2515_v26 }
  0x46   : > { %731 = vmatmul.bf16.gmra.mxu1 %v2519_v27  ;;  %v2618_v27 = vld [vmem:[%s3141_s22 + $0xe0] sm:$0xf] }
  0x47   : > { %v2619_v30 = vor.u32 %v2814_v28, %v2618_v27 }
  0x49   : > { %707 = vmatmul.bf16.gmra.mxu3 %v2619_v30 }
  0x55   : > { %647 = vmatmul.bf16.gmra.mxu0 %v2523_v32  ;;  %v2620_v32 = vld [vmem:[%s3141_s22 + $0xe8] sm:$0xf0] }
  0x56   : > { %736 = vmatmul.bf16.gmra.mxu1 %v2527_v33  ;;  %v2623_v33 = vor.u32 %v2813_v31, %v2620_v32 }
  0x58   : > { %796 = vmatmul.bf16.vlgmr.msra.gmra.mxu2 %v2623_v33 }
  0x65   : > { %652 = vmatmul.bf16.gmra.mxu0 %v2531_v38  ;;  %v2586_v38 = vld [vmem:[%s3141_s22 + $0xa0] sm:$0xf] }
  0x66   : > { %741 = vmatmul.bf16.gmra.mxu1 %v2535_v39  ;;  %v2806_v39 = vld [vmem:[%s3141_s22 + $0xa4] sm:$0xf0] }
  0x67   : > { %v2587_v42 = vor.u32 %v2806_v39, %v2586_v38 }
  0x75   : > { %657 = vmatmul.bf16.gmra.mxu0 %v2539_v44 }
  0x76   : > { %746 = vmatmul.bf16.gmra.mxu1 %v2543_v45 }
  0x85   : > { %662 = vmatmul.bf16.gmra.mxu0 %v2547_v50  ;;  %v2627_v50 = vor.u32 %v2816_v48, %v2626_v47 }
  0x86   : > { %751 = vmatmul.bf16.gmra.mxu1 %v2551_v51  ;;  %v2815_v51 = vld [vmem:[%s3141_s22 + $0xf4] sm:$0xf] }
  0x87   : > { %712 = vmatmul.bf16.gmra.mxu3 %v2627_v50  ;;  %v2631_v53 = vor.u32 %v2815_v51, %v2628_v52 }
  0x89   : > { %801 = vmatmul.bf16.gmra.mxu2 %v2631_v53 }
  0x95   : > { %667 = vmatmul.bf16.gmra.mxu0 %v2555_v56 }
  0x96   : > { %756 = vmatmul.bf16.gmra.mxu1 %v2559_v57 }
  0xa5   : > { %672 = vmatmul.bf16.gmra.mxu0 %v2563_v62  ;;  %v2595_v62 = vor.u32 %v2808_v59, %v2594_v58 }
  0xa6   : > { %761 = vmatmul.bf16.gmra.mxu1 %v2567_v63  ;;  %v2599_v63 = vor.u32 %v2807_v60, %v2596_v61 }
  0xb2   : > { %v638_v7 = vpop.f32.mrf.mxu0 }
  0xb3   : > { %v727_v8 = vpop.f32.mrf.mxu1  ;;  %v639_v9 = vadd.f32 %v3188_v4, %v638_v7 }
  0xb5   : > { %v3193_v12 = vadd.f32 %v727_v8, %v639_v9  ;;  %677 = vmatmul.bf16.gmra.mxu0 %v2571_v5  ;;  %v2602_v9 = vld [vmem:[%s3141_s22 + $0xc0] sm:$0xf] }
  0xb6   : > { %766 = vmatmul.bf16.gmra.mxu1 %v2575_v6 }
  0xba   : > { %v640_v14 = vpop.f32.mrf.mxu0 }
  0xbb   : > { %v729_v15 = vpop.f32.mrf.mxu1  ;;  %v641_v16 = vadd.f32 %v3188_v4, %v640_v14  ;;  %v2603_v14 = vor.u32 %v2810_v10, %v2602_v9 }
  0xbd   : > { %v3196_v17 = vadd.f32 %v729_v15, %v641_v16  ;;  %v2607_v15 = vor.u32 %v2809_v11, %v2604_v13 }
  0xc2   : > { %v643_v24 = vpop.f32.mrf.mxu0 }
  0xc3   : > { %v732_v25 = vpop.f32.mrf.mxu1  ;;  %v644_v26 = vadd.f32 %v3188_v4, %v643_v24 }
  0xc5   : > { %v3205_v29 = vadd.f32 %v732_v25, %v644_v26  ;;  %682 = vmatmul.bf16.gmra.mxu0 %v2579_v22  ;;  %v2811_v25 = vld [vmem:[%s3141_s22 + $0xd4] sm:$0xf]  ;;  %v2612_v26 = vld [vmem:[%s3141_s22 + $0xd8] sm:$0xf0]  ;;  %s4238_s22 = scalar_lea.vmem [#allocation3], %s2501_s21 }
  0xc6   : > { %771 = vmatmul.bf16.gmra.mxu1 %v2583_v23  ;;  %v2615_v27 = vor.u32 %v2811_v25, %v2612_v26 }
  0xca   : > { %v645_v34 = vpop.f32.mrf.mxu0 }
  0xcb   : > { %v734_v35 = vpop.f32.mrf.mxu1  ;;  %v646_v36 = vadd.f32 %v3188_v4, %v645_v34 }
  0xcd   : > { %v3210_v37 = vadd.f32 %v734_v35, %v646_v36 }
  0xcf   : > { %v813_v10 = vsel %vm807_vm0, %v3210_v37, 0.0 }
  0xd2   : > { %v648_v44 = vpop.f32.mrf.mxu0 }
  0xd3   : > { %v737_v45 = vpop.f32.mrf.mxu1  ;;  %v649_v46 = vadd.f32 %v3188_v4, %v648_v44 }
  0xd5   : > { %v3219_v49 = vadd.f32 %v737_v45, %v649_v46  ;;  %687 = vmatmul.bf16.gmra.mxu0 %v2587_v42 }
  0xd6   : > { %776 = vmatmul.bf16.gmra.mxu1 %v2591_v43 }
  0xda   : > { %v650_v54 = vpop.f32.mrf.mxu0 }
  0xdb   : > { %v739_v55 = vpop.f32.mrf.mxu1  ;;  %v651_v56 = vadd.f32 %v3188_v4, %v650_v54 }
  0xdd   : > { %v3224_v57 = vadd.f32 %v739_v55, %v651_v56 }
  0xe2   : > { %v653_v0 = vpop.f32.mrf.mxu0 }
  0xe3   : > { %v742_v1 = vpop.f32.mrf.mxu1  ;;  %v654_v2 = vadd.f32 %v3188_v4, %v653_v0 }
  0xe5   : > { %v3231_v3 = vadd.f32 %v742_v1, %v654_v2  ;;  %692 = vmatmul.bf16.gmra.mxu0 %v2595_v62  ;;  %v3267_v62 = vpop.f32.mrf.mxu3  ;;  %v809_v1 = vsel %vm807_vm0, %v3196_v17, 0.0  ;;  %v808_v2 = vsel %vm807_vm0, %v3193_v12, 0.0 }
  0xe6   : > { %781 = vmatmul.bf16.gmra.mxu1 %v2599_v63 }
  0xea   : > { %v655_v5 = vpop.f32.mrf.mxu0 }
  0xeb   : > { %v744_v6 = vpop.f32.mrf.mxu1  ;;  %v656_v7 = vadd.f32 %v3188_v4, %v655_v5  ;;  %v811_v5 = vsel %vm807_vm0, %v3205_v29, 0.0 }
  0xed   : > { %v3234_v8 = vadd.f32 %v744_v6, %v656_v7  ;;  %v810_v6 = vadd.f32 %v809_v1, %v808_v2  ;;  %v3285_v13 = vpop.f32.mrf.mxu3 }
  0xef   : > { %v812_v11 = vadd.f32 %v811_v5, %v810_v6  ;;  %v821_v25 = vsel %vm807_vm0, %v3234_v8, 0.0 }
  0xf2   : > { %v658_v16 = vpop.f32.mrf.mxu0 }
  0xf3   : > { %v747_v18 = vpop.f32.mrf.mxu1  ;;  %v659_v19 = vadd.f32 %v3188_v4, %v658_v16  ;;  %v817_v16 = vsel %vm807_vm0, %v3224_v57, 0.0 }
  0xf5   : > { %v3241_v20 = vadd.f32 %v747_v18, %v659_v19  ;;  %697 = vmatmul.bf16.gmra.mxu0 %v2603_v14  ;;  %v815_v14 = vsel %vm807_vm0, %v3219_v49, 0.0  ;;  %v819_v19 = vsel %vm807_vm0, %v3231_v3, 0.0 }
  0xf6   : > { %786 = vmatmul.bf16.gmra.mxu1 %v2607_v15  ;;  %v814_v15 = vadd.f32 %v813_v10, %v812_v11 }
  0xf8   : > { %v816_v18 = vadd.f32 %v815_v14, %v814_v15  ;;  %v886_v15 = vsel %vm807_vm0, %v3196_v17, -inf }
  0xfa   : > { %v660_v21 = vpop.f32.mrf.mxu0 }
  0xfb   : > { %v749_v22 = vpop.f32.mrf.mxu1  ;;  %v661_v23 = vadd.f32 %v3188_v4, %v660_v21  ;;  %v818_v21 = vadd.f32 %v817_v16, %v816_v18 }
  0xfd   : > { %v3244_v24 = vadd.f32 %v749_v22, %v661_v23  ;;  %v820_v26 = vadd.f32 %v819_v19, %v818_v21  ;;  %v887_v21 = vsel %vm807_vm0, %v3205_v29, -inf }
  0xff   : > { %4459 = vst [vmem:[#allocation6_spill] sm:$0xff] %v3244_v24 }
 0x102   : > { %v663_v28 = vpop.f32.mrf.mxu0 }
 0x103   : > { %v752_v30 = vpop.f32.mrf.mxu1  ;;  %v664_v31 = vadd.f32 %v3188_v4, %v663_v28  ;;  %v822_v28 = vadd.f32 %v821_v25, %v820_v26  ;;  %v891_v25 = vsel %vm807_vm0, %v3224_v57, -inf  ;;  %v893_v26 = vsel %vm807_vm0, %v3231_v3, -inf }
 0x105   : > { %v3249_v32 = vadd.f32 %v752_v30, %v664_v31  ;;  %v3299_v30 = vpop.f32.mrf.mxu3  ;;  %v825_v31 = vsel %vm807_vm0, %v3244_v24, 0.0 }
 0x106   : > { %791 = vmatmul.bf16.gmra.mxu1 %v2615_v27  ;;  %v823_v27 = vsel %vm807_vm0, %v3241_v20, 0.0 }
 0x10a   : > { %v665_v33 = vpop.f32.mrf.mxu0 }
 0x10b   : > { %v754_v34 = vpop.f32.mrf.mxu1  ;;  %v666_v35 = vadd.f32 %v3188_v4, %v665_v33  ;;  %v824_v33 = vadd.f32 %v823_v27, %v822_v28 }
 0x10d   : > { %v3252_v36 = vadd.f32 %v754_v34, %v666_v35  ;;  %v827_v34 = vsel %vm807_vm0, %v3249_v32, 0.0  ;;  %v3305_v35 = vpop.f32.mrf.mxu2  ;;  %v3320_v10 = vpop.f32.mrf.mxu3 }
 0x10f   : > { %4460 = vst [vmem:[#allocation7_spill] sm:$0xff] %v3252_v36 }
 0x112   : > { %v668_v38 = vpop.f32.mrf.mxu0 }
 0x113   : > { %v757_v39 = vpop.f32.mrf.mxu1  ;;  %v669_v40 = vadd.f32 %v3188_v4, %v668_v38  ;;  %v826_v38 = vadd.f32 %v825_v31, %v824_v33  ;;  %v895_v31 = vsel %vm807_vm0, %v3234_v8, -inf }
 0x115   : > { %v3255_v41 = vadd.f32 %v757_v39, %v669_v40  ;;  %v3346_v28 = vpop.f32.mrf.mxu2 }
 0x11a   : > { %v670_v42 = vpop.f32.mrf.mxu0 }
 0x11b   : > { %v759_v43 = vpop.f32.mrf.mxu1  ;;  %v671_v44 = vadd.f32 %v3188_v4, %v670_v42  ;;  %v829_v42 = vsel %vm807_vm0, %v3252_v36, 0.0 }
 0x11d   : > { %v3258_v45 = vadd.f32 %v759_v43, %v671_v44  ;;  %v828_v44 = vadd.f32 %v827_v34, %v826_v38  ;;  %v888_v34 = vsel %vm807_vm0, %v3210_v37, -inf }
 0x11f   : > { %4461 = vst [vmem:[#allocation8_spill] sm:$0xff] %v3258_v45  ;;  %v833_v1 = vsel %vm807_vm0, %v3258_v45, 0.0 }
 0x122   : > { %v673_v46 = vpop.f32.mrf.mxu0 }
 0x123   : > { %v762_v47 = vpop.f32.mrf.mxu1  ;;  %v674_v48 = vadd.f32 %v3188_v4, %v673_v46  ;;  %v831_v46 = vsel %vm807_vm0, %v3255_v41, 0.0 }
 0x125   : > { %v3261_v50 = vadd.f32 %v762_v47, %v674_v48  ;;  %v830_v48 = vadd.f32 %v829_v42, %v828_v44  ;;  %v897_v42 = vsel %vm807_vm0, %v3241_v20, -inf  ;;  %v899_v44 = vsel %vm807_vm0, %v3244_v24, -inf }
 0x127   : > { %4462 = vst [vmem:[#allocation9_spill] sm:$0xff] %v3261_v50  ;;  %v832_v6 = vadd.f32 %v831_v46, %v830_v48  ;;  %v894_v48 = vmax.f32 %v887_v21, %v893_v26  ;;  %v907_v26 = vsel %vm807_vm0, %v3258_v45, -inf }
 0x12a   : > { %v675_v51 = vpop.f32.mrf.mxu0 }
 0x12b   : > { %v764_v52 = vpop.f32.mrf.mxu1  ;;  %v676_v43 = vadd.f32 %v3188_v4, %v675_v51  ;;  %v835_v51 = vsel %vm807_vm0, %v3261_v50, 0.0 }
 0x12d   : > { %v3317_v2 = vadd.f32 %v764_v52, %v676_v43  ;;  %v834_v52 = vadd.f32 %v833_v1, %v832_v6  ;;  %v896_v1 = vmax.f32 %v888_v34, %v895_v31  ;;  %v901_v6 = vsel %vm807_vm0, %v3249_v32, -inf }
 0x12f   : > { %4463 = vst [vmem:[#allocation10_spill] sm:$0xff] %v3317_v2  ;;  %v837_v19 = vsel %vm807_vm0, %v3317_v2, 0.0  ;;  %v836_v27 = vadd.f32 %v835_v51, %v834_v52 }
 0x131   : > { %v838_v43 = vadd.f32 %v837_v19, %v836_v27  ;;  %v909_v27 = vsel %vm807_vm0, %v3261_v50, -inf }
 0x132   : > { %v678_v53 = vpop.f32.mrf.mxu0 }
 0x133   : > { %v767_v54 = vpop.f32.mrf.mxu1  ;;  %v679_v47 = vadd.f32 %v3188_v4, %v678_v53  ;;  %v885_v53 = vsel %vm807_vm0, %v3193_v12, -inf }
 0x135   : > { %v3324_v11 = vadd.f32 %v767_v54, %v679_v47  ;;  %v892_v47 = vmax.f32 %v886_v15, %v891_v25 }
 0x137   : > { %4464 = vst [vmem:[#allocation11_spill] sm:$0xff] %v3324_v11  ;;  %v900_v52 = vmax.f32 %v892_v47, %v899_v44 }
 0x13a   : > { %v680_v55 = vpop.f32.mrf.mxu0 }
 0x13b   : > { %v769_v56 = vpop.f32.mrf.mxu1  ;;  %v681_v5 = vadd.f32 %v3188_v4, %v680_v55  ;;  %v889_v55 = vsel %vm807_vm0, %v3219_v49, -inf }
 0x13c   : > { %v890_v38 = vmax.f32 %v885_v53, %v889_v55  ;;  %v713_v55 = vpop.f32.mrf.mxu3 }
 0x13d   : > { %v3337_v54 = vadd.f32 %v769_v56, %v681_v5  ;;  %v839_v56 = vsel %vm807_vm0, %v3324_v11, 0.0 }
 0x13e   : > { %v840_v5 = vadd.f32 %v839_v56, %v838_v43  ;;  %v913_v43 = vsel %vm807_vm0, %v3324_v11, -inf }
 0x13f   : > { %4465 = vst [vmem:[#allocation12_spill] sm:$0xff] %v3337_v54  ;;  %v841_v46 = vsel %vm807_vm0, %v3337_v54, 0.0 }
 0x140   : > { %v842_v15 = vadd.f32 %v841_v46, %v840_v5  ;;  %v802_v46 = vpop.f32.mrf.mxu2  ;;  %v908_v5 = vmax.f32 %v900_v52, %v907_v26  ;;  %v711_v52 = vadd.f32 %v3188_v4, %v3320_v10 }
 0x142   : > { %v683_v58 = vpop.f32.mrf.mxu0 }
 0x143   : > { %v3263_v59 = vpop.f32.mrf.mxu1  ;;  %v684_v14 = vadd.f32 %v3188_v4, %v683_v58 }
 0x144   : > { %v715_v10 = vpop.f32.mrf.mxu3 }
 0x14a   : > { %v685_v60 = vpop.f32.mrf.mxu0 }
 0x14b   : > { %v3265_v61 = vpop.f32.mrf.mxu1  ;;  %v686_v58 = vadd.f32 %v3188_v4, %v685_v60  ;;  %v3353_v60 = vadd.f32 %v3263_v59, %v684_v14 }
 0x14d   : > { %4466 = vst [vmem:[#allocation13_spill] sm:$0xff] %v3353_v60  ;;  %v3366_v59 = vadd.f32 %v3265_v61, %v686_v58  ;;  %v843_v51 = vsel %vm807_vm0, %v3353_v60, 0.0  ;;  %v898_v61 = vmax.f32 %v890_v38, %v897_v42  ;;  %v905_v58 = vsel %vm807_vm0, %v3255_v41, -inf }
 0x14e   : > { %v844_v31 = vadd.f32 %v843_v51, %v842_v15 }
 0x14f   : > { %4467 = vst [vmem:[#allocation14_spill] sm:$0xff] %v3366_v59  ;;  %v845_v21 = vsel %vm807_vm0, %v3366_v59, 0.0  ;;  %v906_v42 = vmax.f32 %v898_v61, %v905_v58 }
 0x150   : > { %v846_v44 = vadd.f32 %v845_v21, %v844_v31 }
 0x151   : > { %v914_v51 = vmax.f32 %v906_v42, %v913_v43  ;;  %v3441_v42 = vadd.f32 %v3346_v28, %v711_v52 }
 0x152   : > { %v3269_v63 = vpop.f32.mrf.mxu0 }
 0x153   : > { %v3271_v0 = vpop.f32.mrf.mxu1  ;;  %v689_v33 = vadd.f32 %v3188_v4, %v3269_v63  ;;  %4475 = vst [vmem:[#allocation22_spill] sm:$0xff] %v3441_v42 }
 0x155   : > { %v3375_v14 = vadd.f32 %v3271_v0, %v689_v33  ;;  %v911_v33 = vsel %vm807_vm0, %v3317_v2, -inf }
 0x157   : > { %4468 = vst [vmem:[#allocation15_spill] sm:$0xff] %v3375_v14  ;;  %v847_v34 = vsel %vm807_vm0, %v3375_v14, 0.0 }
 0x15a   : > { %v3279_v7 = vpop.f32.mrf.mxu0 }
 0x15b   : > { %v3281_v9 = vpop.f32.mrf.mxu1  ;;  %v691_v63 = vadd.f32 %v3188_v4, %v3279_v7  ;;  %v903_v7 = vsel %vm807_vm0, %v3252_v36, -inf }
 0x15c   : > { %v904_v38 = vmax.f32 %v896_v1, %v903_v7 }
 0x15d   : > { %v3385_v25 = vadd.f32 %v3281_v9, %v691_v63  ;;  %v915_v63 = vsel %vm807_vm0, %v3337_v54, -inf }
 0x15e   : > { %v912_v1 = vmax.f32 %v904_v38, %v911_v33  ;;  %v916_v15 = vmax.f32 %v908_v5, %v915_v63  ;;  %v804_v5 = vpop.f32.mrf.mxu2 }
 0x15f   : > { %4469 = vst [vmem:[#allocation16_spill] sm:$0xff] %v3385_v25  ;;  %v849_v47 = vsel %vm807_vm0, %v3385_v25, 0.0  ;;  %v923_v33 = vsel %vm807_vm0, %v3385_v25, -inf }
 0x160   : > { %v924_v63 = vmax.f32 %v916_v15, %v923_v33 }
 0x162   : > { %v693_v22 = vpop.f32.mrf.mxu0 }
 0x163   : > { %v3293_v23 = vpop.f32.mrf.mxu1  ;;  %v694_v53 = vadd.f32 %v3188_v4, %v693_v22  ;;  %v902_v22 = vmax.f32 %v894_v48, %v901_v6  ;;  %v848_v6 = vadd.f32 %v847_v34, %v846_v44  ;;  %v716_v44 = vadd.f32 %v3188_v4, %v715_v10 }
 0x164   : > { %v939_v10 = vsel %vm807_vm0, %v3441_v42, -inf }
 0x165   : > { %v3397_v9 = vadd.f32 %v3293_v23, %v694_v53  ;;  %v917_v53 = vsel %vm807_vm0, %v3353_v60, -inf  ;;  %v850_v58 = vadd.f32 %v849_v47, %v848_v6  ;;  %v3463_v52 = vadd.f32 %v804_v5, %v716_v44 }
 0x167   : > { %4470 = vst [vmem:[#allocation17_spill] sm:$0xff] %v3397_v9  ;;  %v851_v61 = vsel %vm807_vm0, %v3397_v9, 0.0 }
 0x168   : > { %v852_v31 = vadd.f32 %v851_v61, %v850_v58  ;;  %4478 = vst [vmem:[#allocation25_spill] sm:$0xff] %v3463_v52 }
 0x16a   : > { %v695_v39 = vpop.f32.mrf.mxu0 }
 0x16b   : > { %v3307_v40 = vpop.f32.mrf.mxu1  ;;  %v696_v0 = vadd.f32 %v3188_v4, %v695_v39 }
 0x16d   : > { %v3407_v48 = vadd.f32 %v3307_v40, %v696_v0  ;;  %v704_v40 = vadd.f32 %v3188_v4, %v3267_v62  ;;  %v919_v0 = vsel %vm807_vm0, %v3366_v59, -inf  ;;  %v709_v62 = vadd.f32 %v3188_v4, %v3299_v30 }
 0x16e   : > { %v925_v30 = vsel %vm807_vm0, %v3397_v9, -inf }
 0x16f   : > { %4471 = vst [vmem:[#allocation18_spill] sm:$0xff] %v3407_v48  ;;  %v853_v26 = vsel %vm807_vm0, %v3407_v48, 0.0  ;;  %v927_v28 = vsel %vm807_vm0, %v3407_v48, -inf  ;;  %v3461_v58 = vadd.f32 %v3305_v35, %v709_v62 }
 0x170   : > { %v854_v38 = vadd.f32 %v853_v26, %v852_v31 }
 0x171   : > { %4477 = vst [vmem:[#allocation24_spill] sm:$0xff] %v3461_v58 }
 0x172   : > { %v698_v16 = vpop.f32.mrf.mxu0 }
 0x173   : > { %v3331_v18 = vpop.f32.mrf.mxu1  ;;  %v699_v39 = vadd.f32 %v3188_v4, %v698_v16  ;;  %v910_v16 = vmax.f32 %v902_v22, %v909_v27  ;;  %v706_v22 = vadd.f32 %v3188_v4, %v3285_v13 }
 0x175   : > { %v3415_v7 = vadd.f32 %v3331_v18, %v699_v39  ;;  %v918_v27 = vmax.f32 %v910_v16, %v917_v53  ;;  %v920_v39 = vmax.f32 %v912_v1, %v919_v0  ;;  %v2994_v16 = vmov 256.0  }
 0x176   : > { %2914 = vrcp.f32 %v2994_v16 }
 0x177   : > { %4472 = vst [vmem:[#allocation19_spill] sm:$0xff] %v3415_v7  ;;  %v855_v34 = vsel %vm807_vm0, %v3415_v7, 0.0  ;;  %v929_v1 = vsel %vm807_vm0, %v3415_v7, -inf  ;;  %v926_v61 = vmax.f32 %v918_v27, %v925_v30  ;;  %v928_v0 = vmax.f32 %v920_v39, %v927_v28 }
 0x178   : > { %v856_v47 = vadd.f32 %v855_v34, %v854_v38  ;;  %v863_v39 = vsel %vm807_vm0, %v3461_v58, 0.0  ;;  %v943_v38 = vsel %vm807_vm0, %v3463_v52, -inf }
 0x17a   : > { %v700_v56 = vpop.f32.mrf.mxu0 }
 0x17b   : > { %v789_v19 = vpop.f32.mrf.mxu1  ;;  %v701_v23 = vadd.f32 %v3188_v4, %v700_v56  ;;  %v714_v56 = vadd.f32 %v3188_v4, %v713_v55 }
 0x17c   : > { %v2915_v62 = vpop.eup %2914 }
 0x17d   : > { %v3427_v18 = vadd.f32 %v789_v19, %v701_v23  ;;  %v921_v19 = vsel %vm807_vm0, %v3375_v14, -inf  ;;  %v3450_v23 = vadd.f32 %v802_v46, %v714_v56  ;;  %vm882_vm1 = vweird.f32 %v2915_v62 }
 0x17e   : > { %v922_v4 = vmax.f32 %v914_v51, %v921_v19  ;;  %v937_v19 = vsel %vm807_vm0, %v3461_v58, -inf }
 0x17f   : > { %4473 = vst [vmem:[#allocation20_spill] sm:$0xff] %v3427_v18  ;;  %v857_v55 = vsel %vm807_vm0, %v3427_v18, 0.0  ;;  %v931_v43 = vsel %vm807_vm0, %v3427_v18, -inf  ;;  %v941_v51 = vsel %vm807_vm0, %v3450_v23, -inf }
 0x180   : > { %4476 = vst [vmem:[#allocation23_spill] sm:$0xff] %v3450_v23  ;;  %v858_v15 = vadd.f32 %v857_v55, %v856_v47  ;;  %v932_v46 = vmax.f32 %v924_v63, %v931_v43  ;;  %v930_v26 = vmax.f32 %v922_v4, %v929_v1  ;;  %v865_v63 = vsel %vm807_vm0, %v3441_v42, 0.0 }
 0x181   : > { %v878_v47 = vmul.f32 256.0, %v2915_v62  ;;  %v867_v1 = vsel %vm807_vm0, %v3450_v23, 0.0  ;;  %v869_v4 = vsel %vm807_vm0, %v3463_v52, 0.0 }
 0x182   : > { %v940_v33 = vmax.f32 %v932_v46, %v939_v10  ;;  %v938_v30 = vmax.f32 %v930_v26, %v937_v19 }
 0x183   : > { %v792_v21 = vpop.f32.mrf.mxu1 }
 0x184   : > { %v3436_v13 = vadd.f32 %v792_v21, %v704_v40  ;;  %v945_v16 = vmax.f32 %v938_v30, %v940_v33 }
 0x186   : > { %4474 = vst [vmem:[#allocation21_spill] sm:$0xff] %v3436_v13  ;;  %v859_v6 = vsel %vm807_vm0, %v3436_v13, 0.0  ;;  %v933_v53 = vsel %vm807_vm0, %v3436_v13, -inf }
 0x187   : > { %v860_v31 = vadd.f32 %v859_v6, %v858_v15  ;;  %v934_v56 = vmax.f32 %v926_v61, %v933_v53  ;;  %v879_v61 = vsub.f32 1.0, %v878_v47  ;;  %v955_v47 = vld [vmem:[%s4411_s4] sm:$0xf] }
 0x189   : > { %v942_v55 = vmax.f32 %v934_v56, %v941_v51  ;;  %v880_v26 = vmul.f32 %v2915_v62, %v879_v61 }
 0x18b   : > { %v794_v40 = vpop.f32.mrf.mxu1 }
 0x18c   : > { %v3465_v21 = vadd.f32 %v794_v40, %v706_v22 }
 0x18e   : > { %4479 = vst [vmem:[#allocation26_spill] sm:$0xff] %v3465_v21  ;;  %v861_v27 = vsel %vm807_vm0, %v3465_v21, 0.0  ;;  %v935_v35 = vsel %vm807_vm0, %v3465_v21, -inf }
 0x18f   : > { %v862_v22 = vadd.f32 %v861_v27, %v860_v31  ;;  %v936_v34 = vmax.f32 %v928_v0, %v935_v35  ;;  %v881_v27 = vadd.f32 %v2915_v62, %v880_v26 }
 0x191   : > { %v864_v43 = vadd.f32 %v863_v39, %v862_v22  ;;  %v944_v44 = vmax.f32 %v936_v34, %v943_v38  ;;  %v954_v22 = vld [vmem:[%s4410_s3] sm:$0xf]  ;;  %v883_v19 = vsel %vm882_vm1, %v2915_v62, %v881_v27  ;;  %vm1379_vm1 = vcmask 130048  }
 0x193   : > { %v866_v5 = vadd.f32 %v865_v63, %v864_v43  ;;  %v946_v28 = vmax.f32 %v942_v55, %v944_v44 }
 0x195   : > { %v947_v6 = vmax.f32 %v945_v16, %v946_v28  ;;  %v868_v53 = vadd.f32 %v867_v1, %v866_v5 }
 0x197   : > { %v948_v15 = vrot.slane %v947_v6, 4  ;;  %v870_v46 = vadd.f32 %v869_v4, %v868_v53 }
 0x199   : > { %v949_v40 = vmax.f32 %v947_v6, %v948_v15  ;;  %v871_v0 = vrot.slane %v870_v46, 4 }
 0x19b   : > { %v950_v31 = vrot.slane %v949_v40, 2  ;;  %v872_v56 = vadd.f32 %v871_v0, %v870_v46 }
 0x19d   : > { %v951_v10 = vmax.f32 %v949_v40, %v950_v31  ;;  %v873_v51 = vrot.slane %v872_v56, 2 }
 0x19f   : > { %v952_v35 = vrot.slane %v951_v10, 1  ;;  %v874_v33 = vadd.f32 %v873_v51, %v872_v56 }
 0x1a1   : > { %v953_v34 = vmax.f32 %v951_v10, %v952_v35  ;;  %v875_v39 = vrot.slane %v874_v33, 1 }
 0x1a3   : > { %v970_v38 = vmul.f32 %v954_v22, %v953_v34  ;;  %v876_v30 = vadd.f32 %v875_v39, %v874_v33 }
 0x1a5   : > { %v971_v55 = vsel %vm957_vm2, %v970_v38, 0.0  ;;  %v884_v43 = vmul.f32 %v883_v19, %v876_v30 }
 0x1a6   : > { %972 = vadd.xlane.f32.xlu0 %v971_v55 }
 0x1a7   : > { %v956_v44 = vmul.f32 %v954_v22, %v884_v43 }
 0x1a9   : > { %v958_v63 = vsel %vm957_vm2, %v956_v44, 0.0 }
 0x1ae   : > { %959 = vadd.xlane.f32.xlu0 %v958_v63 }
 0x219   : > { %v973_v5 = vpop.xlane.xlu0 %972 }
 0x21a   : > { %v974_v16 = vmax.f32 %v973_v5, 0.0 }
 0x21c   : > { %v975_v28 = vmul.f32 %v974_v16, %v955_v47 }
 0x21e   : > { %v976_v1 = vsel %vm957_vm2, %v975_v28, 0.0 }
 0x21f   : > { %v977_v62 = vrot.slane %v976_v1, 4 }
 0x221   : > { %v978_v6 = vadd.f32 %v977_v62, %v976_v1  ;;  %v960_v53 = vpop.xlane.xlu0 %959 }
 0x222   : > { %v961_v4 = vmax.f32 %v960_v53, 0.0 }
 0x223   : > { %v979_v15 = vrot.slane %v978_v6, 2 }
 0x224   : > { %v962_v61 = vmul.f32 %v961_v4, %v955_v47 }
 0x225   : > { %v980_v0 = vadd.f32 %v979_v15, %v978_v6 }
 0x226   : > { %v963_v46 = vsel %vm957_vm2, %v962_v61, 0.0 }
 0x227   : > { %v964_v40 = vrot.slane %v963_v46, 4  ;;  %v981_v56 = vrot.slane %v980_v0, 1 }
 0x229   : > { %v965_v26 = vadd.f32 %v964_v40, %v963_v46  ;;  %v982_v27 = vadd.f32 %v981_v56, %v980_v0 }
 0x22b   : > { %v966_v31 = vrot.slane %v965_v26, 2 }
 0x22d   : > { %v967_v10 = vadd.f32 %v966_v31, %v965_v26 }
 0x22f   : > { %v968_v51 = vrot.slane %v967_v10, 1 }
 0x231   : > { %v969_v35 = vadd.f32 %v968_v51, %v967_v10 }
 0x233   : > { %v983_v33 = vadd.f32 %v982_v27, %v969_v35 }
 0x235   : > { %v2696_v22 = vmul.f32 -1.442695, %v983_v33 }
 0x237   : > { %2916 = vpow2.f32 %v2696_v22 }
 0x23d   : > { %v2917_v34 = vpop.eup %2916 }
 0x23e   : > { %v987_v39 = vadd.f32 1.0, %v2917_v34 }
 0x240   : > { %2918 = vrcp.f32 %v987_v39  ;;  %v999_v55 = vand.u32 2147483648, %v987_v39  ;;  %v997_v44 = vand.u32 2147483647, %v987_v39  ;;  %vm993_vm4 = vweird.f32 %v987_v39 }
 0x242   : > { %v1000_v47 = vor.u32 1.1754944e-38, %v999_v55  ;;  %vm998_vm6 = vcmp.eq.f32.partialorder %v997_v44, 8.507059e+37 }
 0x246   : > { %v2919_v19 = vpop.eup %2918 }
 0x247   : > { %v989_v38 = vmul.f32 %v2919_v19, %v987_v39  ;;  %vm994_vm3 = vweird.f32 %v2919_v19 }
 0x248   : > { %vm995_vm5 = vmor %vm993_vm4, %vm994_vm3 }
 0x249   : > { %v990_v30 = vsub.f32 1.0, %v989_v38 }
 0x24b   : > { %v991_v43 = vmul.f32 %v2919_v19, %v990_v30 }
 0x24d   : > { %v992_v63 = vadd.f32 %v2919_v19, %v991_v43 }
 0x24f   : > { %v996_v5 = vsel %vm995_vm5, %v2919_v19, %v992_v63 }
 0x250   : > { %v3497_v16 = vsel %vm998_vm6, %v1000_v47, %v996_v5 }
 0x251   : > { %v3501_v28 = vmul.f32 %v3497_v16, %v3219_v49  ;;  %v3505_v1 = vmul.f32 %v3497_v16, %v3205_v29  ;;  %v3509_v62 = vmul.f32 %v3497_v16, %v3193_v12  ;;  %v3519_v61 = vmul.f32 %v3497_v16, %v3234_v8 }
 0x252   : > { %v3523_v15 = vmul.f32 %v3497_v16, %v3210_v37  ;;  %v3527_v46 = vmul.f32 %v3497_v16, %v3196_v17  ;;  %v3537_v31 = vmul.f32 %v3497_v16, %v3231_v3  ;;  %v3541_v56 = vmul.f32 %v3497_v16, %v3224_v57 }
 0x253   : > { %v1047_v6 = vsel %vm807_vm0, %v3501_v28, 0.0  ;;  %v1041_v53 = vsel %vm807_vm0, %v3505_v1, 0.0  ;;  %v1035_v4 = vsel %vm807_vm0, %v3509_v62, 0.0  ;;  %v1056_v40 = vsel %vm807_vm0, %v3519_v61, 0.0 }
 0x254   : > { %1048 = vadd.xlane.f32.xlu0 %v1047_v6  ;;  %1042 = vadd.xlane.f32.xlu2 %v1041_v53  ;;  %v1044_v0 = vsel %vm807_vm0, %v3523_v15, 0.0  ;;  %v1038_v26 = vsel %vm807_vm0, %v3527_v46, 0.0  ;;  %v1176_v10 = vsel %vm807_vm0, %v3505_v1, -inf  ;;  %v1053_v51 = vsel %vm807_vm0, %v3537_v31, 0.0 }
 0x255   : > { %1036 = vadd.xlane.f32.xlu1 %v1035_v4  ;;  %v1050_v27 = vsel %vm807_vm0, %v3541_v56, 0.0  ;;  %v3551_v35 = vmul.f32 %v3497_v16, %v3244_v24  ;;  %v1173_v22 = vsel %vm807_vm0, %v3527_v46, -inf  ;;  %v1170_v34 = vsel %vm807_vm0, %v3509_v62, -inf }
 0x256   : > { %v3561_v39 = vmul.f32 %v3497_v16, %v3249_v32  ;;  %v3565_v19 = vmul.f32 %v3497_v16, %v3241_v20  ;;  %v1179_v55 = vsel %vm807_vm0, %v3523_v15, -inf  ;;  %v1191_v43 = vsel %vm807_vm0, %v3519_v61, -inf }
 0x257   : > { %v1062_v33 = vsel %vm807_vm0, %v3551_v35, 0.0  ;;  %v1185_v44 = vsel %vm807_vm0, %v3541_v56, -inf  ;;  %v1182_v63 = vsel %vm807_vm0, %v3501_v28, -inf  ;;  %v3581_v47 = vmul.f32 %v3497_v16, %v3252_v36 }
 0x258   : > { %v1065_v38 = vsel %vm807_vm0, %v3561_v39, 0.0  ;;  %v1059_v30 = vsel %vm807_vm0, %v3565_v19, 0.0  ;;  %v1194_v5 = vsel %vm807_vm0, %v3565_v19, -inf  ;;  %v1188_v6 = vsel %vm807_vm0, %v3537_v31, -inf }
 0x259   : > { %4480 = vst [vmem:[#allocation27_spill] sm:$0xff] %v3581_v47  ;;  %v1068_v53 = vsel %vm807_vm0, %v3581_v47, 0.0  ;;  %v3591_v4 = vmul.f32 %v3497_v16, %v3317_v2 }
 0x25b   : > { %4481 = vst [vmem:[#allocation28_spill] sm:$0xff] %v3591_v4 }
 0x25c   : > { %1057 = vadd.xlane.f32.xlu0 %v1056_v40  ;;  %1045 = vadd.xlane.f32.xlu2 %v1044_v0  ;;  %v3595_v40 = vmul.f32 %v3497_v16, %v3258_v45  ;;  %v3599_v0 = vmul.f32 %v3497_v16, %v3255_v41 }
 0x25d   : > { %1039 = vadd.xlane.f32.xlu1 %v1038_v26  ;;  %v1080_v26 = vsel %vm807_vm0, %v3591_v4, 0.0 }
 0x264   : > { %1177 = vmax.xlane.f32.xlu0 %v1176_v10  ;;  %1054 = vadd.xlane.f32.xlu2 %v1053_v51  ;;  %v1074_v10 = vsel %vm807_vm0, %v3595_v40, 0.0  ;;  %v1071_v51 = vsel %vm807_vm0, %v3599_v0, 0.0 }
 0x265   : > { %1051 = vadd.xlane.f32.xlu1 %v1050_v27  ;;  %v3609_v27 = vmul.f32 %v3497_v16, %v3261_v50 }
 0x267   : > { %4482 = vst [vmem:[#allocation29_spill] sm:$0xff] %v3609_v27 }
 0x26c   : > { %1063 = vadd.xlane.f32.xlu0 %v1062_v33  ;;  %1174 = vmax.xlane.f32.xlu2 %v1173_v22  ;;  %v1206_v33 = vsel %vm807_vm0, %v3599_v0, -inf  ;;  %v1077_v22 = vsel %vm807_vm0, %v3609_v27, 0.0 }
 0x26d   : > { %1171 = vmax.xlane.f32.xlu1 %v1170_v34  ;;  %v1197_v34 = vsel %vm807_vm0, %v3551_v35, -inf }
 0x274   : > { %1066 = vadd.xlane.f32.xlu0 %v1065_v38  ;;  %1060 = vadd.xlane.f32.xlu2 %v1059_v30  ;;  %v3619_v38 = vmul.f32 %v3497_v16, %v3337_v54 }
 0x275   : > { %1180 = vmax.xlane.f32.xlu1 %v1179_v55  ;;  %v1203_v55 = vsel %vm807_vm0, %v3581_v47, -inf }
 0x276   : > { %4483 = vst [vmem:[#allocation30_spill] sm:$0xff] %v3619_v38  ;;  %v1086_v30 = vsel %vm807_vm0, %v3619_v38, 0.0 }
 0x27c   : > { %1192 = vmax.xlane.f32.xlu0 %v1191_v43  ;;  %1186 = vmax.xlane.f32.xlu2 %v1185_v44  ;;  %v1200_v43 = vsel %vm807_vm0, %v3561_v39, -inf  ;;  %v3629_v44 = vmul.f32 %v3497_v16, %v3324_v11 }
 0x27d   : > { %1183 = vmax.xlane.f32.xlu1 %v1182_v63  ;;  %v1212_v63 = vsel %vm807_vm0, %v3609_v27, -inf }
 0x27e   : > { %4484 = vst [vmem:[#allocation31_spill] sm:$0xff] %v3629_v44 }
 0x284   : > { %1195 = vmax.xlane.f32.xlu0 %v1194_v5  ;;  %1189 = vmax.xlane.f32.xlu2 %v1188_v6  ;;  %v1083_v5 = vsel %vm807_vm0, %v3629_v44, 0.0  ;;  %v1209_v6 = vsel %vm807_vm0, %v3595_v40, -inf }
 0x285   : > { %1069 = vadd.xlane.f32.xlu1 %v1068_v53  ;;  %v3639_v53 = vmul.f32 %v3497_v16, %v3385_v25 }
 0x287   : > { %4485 = vst [vmem:[#allocation32_spill] sm:$0xff] %v3639_v53 }
 0x28c   : > { %1081 = vadd.xlane.f32.xlu0 %v1080_v26  ;;  %1075 = vadd.xlane.f32.xlu2 %v1074_v10  ;;  %v3643_v26 = vmul.f32 %v3497_v16, %v3366_v59  ;;  %v3647_v10 = vmul.f32 %v3497_v16, %v3353_v60  ;;  %v2995_v60 = vmov 64.0  }
 0x28d   : > { %1072 = vadd.xlane.f32.xlu1 %v1071_v51  ;;  %v1098_v51 = vsel %vm807_vm0, %v3639_v53, 0.0  ;;  %2920 = vrcp.f32 %v2995_v60 }
 0x28e   : > { %4486 = vst [vmem:[#allocation33_spill] sm:$0xff] %v3643_v26 }
 0x28f   : > { %4487 = vst [vmem:[#allocation34_spill] sm:$0xff] %v3647_v10 }
 0x294   : > { %1207 = vmax.xlane.f32.xlu0 %v1206_v33  ;;  %1078 = vadd.xlane.f32.xlu2 %v1077_v22  ;;  %v1092_v33 = vsel %vm807_vm0, %v3643_v26, 0.0  ;;  %v1089_v22 = vsel %vm807_vm0, %v3647_v10, 0.0 }
 0x295   : > { %1198 = vmax.xlane.f32.xlu1 %v1197_v34  ;;  %v3657_v34 = vmul.f32 %v3497_v16, %v3375_v14  ;;  %v4434_v14 = vlaneseq }
 0x297   : > { %4488 = vst [vmem:[#allocation35_spill] sm:$0xff] %v3657_v34 }
 0x29c   : > { %1087 = vadd.xlane.f32.xlu0 %v1086_v30  ;;  %1204 = vmax.xlane.f32.xlu2 %v1203_v55  ;;  %v1218_v30 = vsel %vm807_vm0, %v3629_v44, -inf  ;;  %v1095_v55 = vsel %vm807_vm0, %v3657_v34, 0.0 }
 0x29d   : > { %1201 = vmax.xlane.f32.xlu1 %v1200_v43  ;;  %v1215_v43 = vsel %vm807_vm0, %v3591_v4, -inf }
 0x2a4   : > { %1213 = vmax.xlane.f32.xlu0 %v1212_v63  ;;  %1084 = vadd.xlane.f32.xlu2 %v1083_v5  ;;  %v3667_v63 = vmul.f32 %v3497_v16, %v3407_v48  ;;  %v3671_v5 = vmul.f32 %v3497_v16, %v3397_v9  ;;  %v3738_v9 = vand.u32 127, %v4434_v14  ;;  %v3750_v14 = vmul.f32 %v3497_v16, %v3441_v42 }
 0x2a5   : > { %1210 = vmax.xlane.f32.xlu1 %v1209_v6  ;;  %v1227_v6 = vsel %vm807_vm0, %v3643_v26, -inf  ;;  %v3719_v26 = vmul.f32 %v3497_v16, %v3436_v13 }
 0x2a6   : > { %4489 = vst [vmem:[#allocation36_spill] sm:$0xff] %v3667_v63  ;;  %v1122_v60 = vsel %vm807_vm0, %v3750_v14, 0.0 }
 0x2a7   : > { %4490 = vst [vmem:[#allocation37_spill] sm:$0xff] %v3671_v5 }
 0x2a8   : > { %4495 = vst [vmem:[#allocation42_spill] sm:$0xff] %v3719_v26 }
 0x2a9   : > { %4496 = vst [vmem:[#allocation43_spill] sm:$0xff] %v3750_v14 }
 0x2ac   : > { %1099 = vadd.xlane.f32.xlu0 %v1098_v51  ;;  %1093 = vadd.xlane.f32.xlu2 %v1092_v33  ;;  %v1104_v51 = vsel %vm807_vm0, %v3667_v63, 0.0  ;;  %v1101_v33 = vsel %vm807_vm0, %v3671_v5, 0.0 }
 0x2ad   : > { %1090 = vadd.xlane.f32.xlu1 %v1089_v22  ;;  %v1230_v22 = vsel %vm807_vm0, %v3657_v34, -inf  ;;  %v1239_v34 = vsel %vm807_vm0, %v3667_v63, -inf }
 0x2b4   : > { %1219 = vmax.xlane.f32.xlu0 %v1218_v30  ;;  %1096 = vadd.xlane.f32.xlu2 %v1095_v55  ;;  %v1224_v30 = vsel %vm807_vm0, %v3647_v10, -inf  ;;  %v1221_v55 = vsel %vm807_vm0, %v3619_v38, -inf }
 0x2b5   : > { %1216 = vmax.xlane.f32.xlu1 %v1215_v43 }
 0x2bc   : > { %1228 = vmax.xlane.f32.xlu0 %v1227_v6  ;;  %1105 = vadd.xlane.f32.xlu2 %v1104_v51  ;;  %v3691_v51 = vmul.f32 %v3497_v16, %v3465_v21 }
 0x2bd   : > { %1102 = vadd.xlane.f32.xlu1 %v1101_v33  ;;  %v3695_v33 = vmul.f32 %v3497_v16, %v3427_v18 }
 0x2be   : > { %4491 = vst [vmem:[#allocation38_spill] sm:$0xff] %v3691_v51 }
 0x2bf   : > { %4492 = vst [vmem:[#allocation39_spill] sm:$0xff] %v3695_v33  ;;  %v1245_v44 = vsel %vm807_vm0, %v3695_v33, -inf }
 0x2c4   : > { %1231 = vmax.xlane.f32.xlu0 %v1230_v22  ;;  %1225 = vmax.xlane.f32.xlu2 %v1224_v30  ;;  %v3701_v22 = vmul.f32 %v3497_v16, %v3415_v7  ;;  %v1116_v30 = vsel %vm807_vm0, %v3691_v51, 0.0  ;;  %v3715_v7 = vmul.f32 %v3497_v16, %v3461_v58 }
 0x2c5   : > { %1222 = vmax.xlane.f32.xlu1 %v1221_v55  ;;  %v1110_v55 = vsel %vm807_vm0, %v3695_v33, 0.0 }
 0x2c6   : > { %4493 = vst [vmem:[#allocation40_spill] sm:$0xff] %v3701_v22  ;;  %v1107_v59 = vsel %vm807_vm0, %v3701_v22, 0.0  ;;  %v1242_v50 = vsel %vm807_vm0, %v3701_v22, -inf  ;;  %v1257_v22 = vsel %vm807_vm0, %v3750_v14, -inf }
 0x2c7   : > { %v3685_v43 = vpop.xlane.xlu0 %1048  ;;  %v3687_v6 = vpop.xlane.xlu2 %1042  ;;  %4494 = vst [vmem:[#allocation41_spill] sm:$0xff] %v3715_v7 }
 0x2c8   : > { %v3697_v25 = vpop.xlane.xlu1 %1036 }
 0x2cc   : > { %1117 = vadd.xlane.f32.xlu0 %v1116_v30  ;;  %1111 = vadd.xlane.f32.xlu2 %v1110_v55  ;;  %v1119_v30 = vsel %vm807_vm0, %v3715_v7, 0.0  ;;  %v1233_v55 = vsel %vm807_vm0, %v3639_v53, -inf }
 0x2cd   : > { %1108 = vadd.xlane.f32.xlu1 %v1107_v59  ;;  %v1113_v59 = vsel %vm807_vm0, %v3719_v26, 0.0 }
 0x2cf   : > { %v3709_v18 = vpop.xlane.xlu0 %1057  ;;  %v3711_v48 = vpop.xlane.xlu2 %1045 }
 0x2d0   : > { %v3721_v21 = vpop.xlane.xlu1 %1039 }
 0x2d4   : > { %1120 = vadd.xlane.f32.xlu0 %v1119_v30  ;;  %1114 = vadd.xlane.f32.xlu2 %v1113_v59  ;;  %v1236_v30 = vsel %vm807_vm0, %v3671_v5, -inf  ;;  %v3743_v59 = vadd.s32 4294967288, %v3738_v9 }
 0x2d5   : > { %1234 = vmax.xlane.f32.xlu1 %v1233_v55 }
 0x2d7   : > { %v1178_v58 = vpop.xlane.xlu0 %1177  ;;  %v3729_v11 = vpop.xlane.xlu2 %1054 }
 0x2d8   : > { %v3731_v13 = vpop.xlane.xlu1 %1051 }
 0x2dc   : > { %1246 = vmax.xlane.f32.xlu0 %v1245_v44  ;;  %1240 = vmax.xlane.f32.xlu2 %v1239_v34 }
 0x2dd   : > { %1237 = vmax.xlane.f32.xlu1 %v1236_v30  ;;  %v1248_v30 = vsel %vm807_vm0, %v3719_v26, -inf }
 0x2df   : > { %v3745_v55 = vpop.xlane.xlu0 %1063  ;;  %v1175_v53 = vpop.xlane.xlu2 %1174 }
 0x2e0   : > { %v1310_v33 = vperm.slane %v1175_v53, %v3743_v59  ;;  %v1172_v63 = vpop.xlane.xlu1 %1171  ;;  %v2921_v53 = vpop.eup %2920 }
 0x2e1   : > { %v1308_v44 = vperm.slane %v1172_v63, %v3738_v9  ;;  %v3764_v63 = vmul.f32 %v3497_v16, %v3463_v52  ;;  %v1132_v26 = vmul.f32 64.0, %v2921_v53  ;;  %vm1136_vm9 = vweird.f32 %v2921_v53 }
 0x2e3   : > { %v1312_v34 = vsel %vm1311_vm7, %v1310_v33, %v1308_v44  ;;  %4497 = vst [vmem:[#allocation44_spill] sm:$0xff] %v3764_v63  ;;  %v3768_v44 = vmul.f32 %v3497_v16, %v3450_v23  ;;  %v1128_v52 = vsel %vm807_vm0, %v3764_v63, 0.0 }
 0x2e4   : > { %1249 = vmax.xlane.f32.xlu0 %v1248_v30  ;;  %1243 = vmax.xlane.f32.xlu2 %v1242_v50  ;;  %v1313_v50 = vperm.slane %v1178_v58, %v3738_v9  ;;  %v1133_v58 = vsub.f32 1.0, %v1132_v26  ;;  %v1254_v26 = vsel %vm807_vm0, %v3715_v7, -inf }
 0x2e5   : > { %1123 = vadd.xlane.f32.xlu1 %v1122_v60  ;;  %4498 = vst [vmem:[#allocation45_spill] sm:$0xff] %v3768_v44  ;;  %v1125_v16 = vsel %vm807_vm0, %v3768_v44, 0.0 }
 0x2e7   : > { %v3760_v42 = vpop.xlane.xlu0 %1066  ;;  %v1061_v5 = vpop.xlane.xlu2 %1060 }
 0x2e8   : > { %v1181_v33 = vpop.xlane.xlu1 %1180 }
 0x2e9   : > { %v1314_v30 = vperm.slane %v1181_v33, %v3743_v59  ;;  %v1270_v33 = vld [vmem:[%s4412_s5 + $0x8] sm:$0xff] }
 0x2ea   : > { %1519 = vmatpush.msrb.mxu3 %v1270_v33 }
 0x2eb   : > { %v1315_v60 = vsel %vm1311_vm7, %v1314_v30, %v1313_v50  ;;  %v1269_v50 = vld [vmem:[%s4412_s5] sm:$0xff] }
 0x2ec   : > { %v3778_v10 = vsel %vm1358_vm8, %v1315_v60, %v1312_v34  ;;  %1258 = vmax.xlane.f32.xlu0 %v1257_v22  ;;  %1129 = vadd.xlane.f32.xlu2 %v1128_v52  ;;  %v1134_v52 = vmul.f32 %v2921_v53, %v1133_v58  ;;  %v1251_v60 = vsel %vm807_vm0, %v3691_v51, -inf }
 0x2ed   : > { %1126 = vadd.xlane.f32.xlu1 %v1125_v16  ;;  %1520 = vmatpush.msrb.mxu3 %v1269_v50 }
 0x2ee   : > { %v1135_v16 = vadd.f32 %v2921_v53, %v1134_v52  ;;  %v1263_v52 = vsel %vm807_vm0, %v3764_v63, -inf }
 0x2ef   : > { %v3788_v30 = vpop.xlane.xlu0 %1192  ;;  %v3790_v34 = vpop.xlane.xlu2 %1186 }
 0x2f0   : > { %v3792_v22 = vpop.xlane.xlu1 %1183  ;;  %v3802_v27 = vsel %vm1136_vm9, %v2921_v53, %v1135_v16  ;;  %v1260_v53 = vsel %vm807_vm0, %v3768_v44, -inf }
 0x2f1   : > { %v1141_v58 = vmul.f32 %v3802_v27, %v3711_v48  ;;  %v1139_v50 = vmul.f32 %v3802_v27, %v3721_v21  ;;  %v1138_v7 = vmul.f32 %v3802_v27, %v3697_v25  ;;  %v1142_v48 = vmul.f32 %v3802_v27, %v3685_v43 }
 0x2f2   : > { %v1144_v16 = vmul.f32 %v3802_v27, %v3729_v11  ;;  %v1146_v63 = vmul.f32 %v3802_v27, %v1061_v5  ;;  %v1145_v43 = vmul.f32 %v3802_v27, %v3709_v18  ;;  %v1147_v11 = vmul.f32 %v3802_v27, %v3745_v55 }
 0x2f3   : > { %v1443_v21 = vperm.slane %v1141_v58, %v3743_v59  ;;  %v1439_v44 = vperm.slane %v1138_v7, %v3738_v9  ;;  %v1148_v18 = vmul.f32 %v3802_v27, %v3760_v42 }
 0x2f4   : > { %1255 = vmax.xlane.f32.xlu2 %v1254_v26  ;;  %v1143_v26 = vmul.f32 %v3802_v27, %v3731_v13  ;;  %v1440_v13 = vperm.slane %v1139_v50, %v3743_v59  ;;  %v1445_v50 = vperm.slane %v1142_v48, %v3738_v9  ;;  %v1448_v7 = vperm.slane %v1144_v16, %v3738_v9 }
 0x2f5   : > { %1252 = vmax.xlane.f32.xlu1 %v1251_v60  ;;  %v1140_v60 = vmul.f32 %v3802_v27, %v3687_v6  ;;  %v1451_v48 = vperm.slane %v1146_v63, %v3738_v9  ;;  %v1449_v55 = vperm.slane %v1145_v43, %v3743_v59  ;;  %v1454_v16 = vperm.slane %v1148_v18, %v3738_v9 }
 0x2f6   : > { %v1446_v6 = vperm.slane %v1143_v26, %v3743_v59 }
 0x2f7   : > { %v3798_v14 = vpop.xlane.xlu0 %1195  ;;  %v3800_v33 = vpop.xlane.xlu2 %1189  ;;  %v1442_v51 = vperm.slane %v1140_v60, %v3738_v9  ;;  %v1441_v60 = vsel %vm1311_vm7, %v1440_v13, %v1439_v44  ;;  %v1450_v42 = vsel %vm1311_vm7, %v1449_v55, %v1448_v7 }
 0x2f8   : > { %v1070_v23 = vpop.xlane.xlu1 %1069 }
 0x2f9   : > { %v1149_v58 = vmul.f32 %v3802_v27, %v1070_v23  ;;  %v1444_v54 = vsel %vm1311_vm7, %v1443_v21, %v1442_v51  ;;  %v1447_v23 = vsel %vm1311_vm7, %v1446_v6, %v1445_v50  ;;  %v1452_v51 = vperm.slane %v1147_v11, %v3743_v59 }
 0x2fb   : > { %v1453_v6 = vsel %vm1311_vm7, %v1452_v51, %v1451_v48 }
 0x2fc   : > { %1264 = vmax.xlane.f32.xlu2 %v1263_v52 }
 0x2fd   : > { %1261 = vmax.xlane.f32.xlu1 %v1260_v53 }
 0x2ff   : > { %v1082_v25 = vpop.xlane.xlu0 %1081  ;;  %v1076_v52 = vpop.xlane.xlu2 %1075 }
 0x300   : > { %v1073_v53 = vpop.xlane.xlu1 %1072  ;;  %v1151_v26 = vmul.f32 %v3802_v27, %v1076_v52  ;;  %v1455_v52 = vperm.slane %v1149_v58, %v3743_v59  ;;  %v1153_v63 = vmul.f32 %v3802_v27, %v1082_v25 }
 0x301   : > { %v1150_v5 = vmul.f32 %v3802_v27, %v1073_v53  ;;  %v1487_v53 = vsel %vm1358_vm8, %v1444_v54, %v1441_v60 }
 0x302   : > { %v1458_v44 = vperm.slane %v1151_v26, %v3743_v59  ;;  %v1488_v13 = vsel %vm1360_vm10, %v1447_v23, %v1487_v53  ;;  %v1456_v54 = vsel %vm1311_vm7, %v1455_v52, %v1454_v16  ;;  %v1461_v25 = vperm.slane %v1153_v63, %v3743_v59  ;;  %v2698_v52 = vld [vmem:[%s4412_s5 + $0x78] sm:$0xff]  ;;  %v2697_v53 = vld [vmem:[%s4412_s5 + $0x70] sm:$0xff] }
 0x303   : > { %v1457_v21 = vperm.slane %v1150_v5, %v3738_v9  ;;  %v1489_v26 = vsel %vm1362_vm11, %v1450_v42, %v1488_v13  ;;  %1398 = vmatpush.msrb.mxu2 %v2698_v52 }
 0x304   : > { %v1490_v60 = vsel %vm1364_vm12, %v1453_v6, %v1489_v26  ;;  %v1319_v26 = vperm.slane %v3800_v33, %v3738_v9 }
 0x305   : > { %v1459_v5 = vsel %vm1311_vm7, %v1458_v44, %v1457_v21  ;;  %v1491_v18 = vsel %vm1366_vm13, %v1456_v54, %v1490_v60  ;;  %1399 = vmatpush.msrb.mxu2 %v2697_v53  ;;  %v1316_v54 = vperm.slane %v3792_v22, %v3738_v9  ;;  %v1320_v60 = vperm.slane %v3788_v30, %v3743_v59 }
 0x306   : > { %v1492_v23 = vsel %vm1368_vm14, %v1459_v5, %v1491_v18 }
 0x307   : > { %v1208_v43 = vpop.xlane.xlu0 %1207  ;;  %v1079_v58 = vpop.xlane.xlu2 %1078 }
 0x308   : > { %v1152_v50 = vmul.f32 %v3802_v27, %v1079_v58  ;;  %v1199_v11 = vpop.xlane.xlu1 %1198  ;;  %v1317_v58 = vperm.slane %v3790_v34, %v3743_v59  ;;  %v1322_v34 = vperm.slane %v3798_v14, %v3738_v9  ;;  %v1328_v33 = vperm.slane %v1208_v43, %v3738_v9 }
 0x309   : > { %v1323_v5 = vperm.slane %v1199_v11, %v3743_v59 }
 0x30a   : > { %v1460_v7 = vperm.slane %v1152_v50, %v3738_v9  ;;  %v1318_v18 = vsel %vm1311_vm7, %v1317_v58, %v1316_v54 }
 0x30b   : > { %v1324_v11 = vsel %vm1311_vm7, %v1323_v5, %v1322_v34  ;;  %v1361_v30 = vsel %vm1360_vm10, %v1318_v18, %v3778_v10 }
 0x30c   : > { %v1462_v48 = vsel %vm1311_vm7, %v1461_v25, %v1460_v7 }
 0x30d   : > { %v3865_v55 = vsel %vm1370_vm15, %v1462_v48, %v1492_v23  ;;  %v1321_v23 = vsel %vm1311_vm7, %v1320_v60, %v1319_v26 }
 0x30e   : > { %2701 = vmatmul.msk.f32.vlgmr.msrb.gmra.mxu3 %vm1379_vm1, %v3865_v55 }
 0x30f   : > { %v3875_v51 = vpop.xlane.xlu0 %1087  ;;  %v1205_v44 = vpop.xlane.xlu2 %1204 }
 0x310   : > { %v1202_v21 = vpop.xlane.xlu1 %1201  ;;  %v1326_v25 = vperm.slane %v1205_v44, %v3743_v59  ;;  %v1363_v44 = vsel %vm1362_vm11, %v1321_v23, %v1361_v30 }
 0x311   : > { %v1325_v7 = vperm.slane %v1202_v21, %v3738_v9 }
 0x313   : > { %v1327_v48 = vsel %vm1311_vm7, %v1326_v25, %v1325_v7 }
 0x317   : > { %v1214_v42 = vpop.xlane.xlu0 %1213  ;;  %v1085_v13 = vpop.xlane.xlu2 %1084 }
 0x318   : > { %v1211_v16 = vpop.xlane.xlu1 %1210  ;;  %v1331_v58 = vperm.slane %v1214_v42, %v3738_v9 }
 0x319   : > { %v1329_v22 = vperm.slane %v1211_v16, %v3743_v59  ;;  %v1365_v16 = vsel %vm1364_vm12, %v1324_v11, %v1363_v44  ;;  %v2707_v44 = vld [vmem:[%s4412_s5 + $0x80] sm:$0xff] }
 0x31a   : > { %v1367_v54 = vsel %vm1366_vm13, %v1327_v48, %v1365_v16  ;;  %v2708_v48 = vld [vmem:[%s4412_s5 + $0x88] sm:$0xff] }
 0x31b   : > { %v1330_v14 = vsel %vm1311_vm7, %v1329_v22, %v1328_v33  ;;  %1581 = vmatpush.msra.mxu3 %v2708_v48 }
 0x31c   : > { %v1369_v10 = vsel %vm1368_vm14, %v1330_v14, %v1367_v54 }
 0x31d   : > { %1582 = vmatpush.msra.mxu3 %v2707_v44 }
 0x31f   : > { %v1100_v63 = vpop.xlane.xlu0 %1099  ;;  %v1094_v6 = vpop.xlane.xlu2 %1093 }
 0x320   : > { %v1091_v50 = vpop.xlane.xlu1 %1090  ;;  %v1159_v44 = vmul.f32 %v3802_v27, %v1100_v63 }
 0x327   : > { %v3898_v52 = vpop.xlane.xlu0 %1219  ;;  %v1097_v53 = vpop.xlane.xlu2 %1096 }
 0x328   : > { %v1217_v21 = vpop.xlane.xlu1 %1216  ;;  %v1158_v54 = vmul.f32 %v3802_v27, %v1097_v53 }
 0x329   : > { %v1332_v43 = vperm.slane %v1217_v21, %v3743_v59 }
 0x32b   : > { %v1333_v26 = vsel %vm1311_vm7, %v1332_v43, %v1331_v58  ;;  %v1157_v58 = vmul.f32 %v3802_v27, %v1094_v6  ;;  %v1156_v43 = vmul.f32 %v3802_v27, %v1091_v50  ;;  %v1155_v50 = vmul.f32 %v3802_v27, %v3875_v51 }
 0x32c   : > { %v3909_v5 = vsel %vm1370_vm15, %v1333_v26, %v1369_v10  ;;  %v1154_v10 = vmul.f32 %v3802_v27, %v1085_v13  ;;  %v1470_v51 = vperm.slane %v1159_v44, %v3743_v59 }
 0x32d   : > { %2699 = vmatmul.msk.f32.vlgmr.msrb.gmra.mxu2 %vm1379_vm1, %v3909_v5  ;;  %v1467_v13 = vperm.slane %v1157_v58, %v3743_v59  ;;  %v1466_v53 = vperm.slane %v1156_v43, %v3738_v9 }
 0x32e   : > { %v1463_v63 = vperm.slane %v1154_v10, %v3738_v9 }
 0x32f   : > { %v3913_v60 = vpop.xlane.xlu0 %1228  ;;  %v1106_v25 = vpop.xlane.xlu2 %1105 }
 0x330   : > { %v1103_v7 = vpop.xlane.xlu1 %1102  ;;  %v1161_v26 = vmul.f32 %v3802_v27, %v1106_v25 }
 0x331   : > { %v1160_v36 = vmul.f32 %v3802_v27, %v1103_v7  ;;  %v1469_v7 = vperm.slane %v1158_v54, %v3738_v9  ;;  %v1464_v54 = vperm.slane %v1155_v50, %v3743_v59 }
 0x337   : > { %v3915_v18 = vpop.xlane.xlu2 %1225  ;;  %v3919_v34 = vpop.xlane.xlu0 %1231 }
 0x338   : > { %v3917_v42 = vpop.xlane.xlu1 %1222 }
 0x33f   : > { %v1112_v22 = vpop.xlane.xlu2 %1111  ;;  %v1118_v33 = vpop.xlane.xlu0 %1117 }
 0x340   : > { %v1109_v23 = vpop.xlane.xlu1 %1108  ;;  %v1163_v38 = vmul.f32 %v3802_v27, %v1112_v22  ;;  %v1473_v22 = vperm.slane %v1161_v26, %v3743_v59  ;;  %v1165_v24 = vmul.f32 %v3802_v27, %v1118_v33  ;;  %v1471_v26 = vsel %vm1311_vm7, %v1470_v51, %v1469_v7 }
 0x341   : > { %v1162_v6 = vmul.f32 %v3802_v27, %v1109_v23  ;;  %v1472_v23 = vperm.slane %v1160_v36, %v3738_v9  ;;  %v1465_v33 = vsel %vm1311_vm7, %v1464_v54, %v1463_v63 }
 0x342   : > { %v1476_v58 = vperm.slane %v1163_v38, %v3743_v59  ;;  %v1479_v38 = vperm.slane %v1165_v24, %v3743_v59 }
 0x343   : > { %v1475_v43 = vperm.slane %v1162_v6, %v3738_v9  ;;  %v1474_v44 = vsel %vm1311_vm7, %v1473_v22, %v1472_v23 }
 0x347   : > { %v1115_v11 = vpop.xlane.xlu2 %1114  ;;  %v1121_v14 = vpop.xlane.xlu0 %1120 }
 0x348   : > { %v3921_v30 = vpop.xlane.xlu1 %1234  ;;  %v1164_v25 = vmul.f32 %v3802_v27, %v1115_v11  ;;  %v1166_v11 = vmul.f32 %v3802_v27, %v1121_v14  ;;  %v1477_v14 = vsel %vm1311_vm7, %v1476_v58, %v1475_v43  ;;  %v1337_v43 = vperm.slane %v3915_v18, %v3738_v9 }
 0x34a   : > { %v1478_v10 = vperm.slane %v1164_v25, %v3738_v9  ;;  %v1481_v50 = vperm.slane %v1166_v11, %v3738_v9  ;;  %v1335_v11 = vperm.slane %v3917_v42, %v3743_v59 }
 0x34f   : > { %v3929_v21 = vpop.xlane.xlu2 %1240  ;;  %v3939_v2 = vpop.xlane.xlu0 %1246 }
 0x350   : > { %v3931_v16 = vpop.xlane.xlu1 %1237  ;;  %v1344_v18 = vperm.slane %v3929_v21, %v3743_v59 }
 0x351   : > { %v1343_v42 = vperm.slane %v3931_v16, %v3738_v9  ;;  %v1347_v16 = vperm.slane %v3939_v2, %v3743_v59 }
 0x357   : > { %v3941_v48 = vpop.xlane.xlu2 %1243  ;;  %v1250_v7 = vpop.xlane.xlu0 %1249 }
 0x358   : > { %v1124_v47 = vpop.xlane.xlu1 %1123 }
 0x359   : > { %v1167_v4 = vmul.f32 %v3802_v27, %v1124_v47  ;;  %v1468_v47 = vsel %vm1311_vm7, %v1467_v13, %v1466_v53 }
 0x35a   : > { %v1494_v6 = vsel %vm1358_vm8, %v1468_v47, %v1465_v33  ;;  %v1341_v47 = vperm.slane %v3921_v30, %v3743_v59  ;;  %v1340_v30 = vperm.slane %v3919_v34, %v3738_v9 }
 0x35b   : > { %v1482_v36 = vperm.slane %v1167_v4, %v3743_v59  ;;  %v1495_v25 = vsel %vm1360_vm10, %v1471_v26, %v1494_v6  ;;  %v1480_v4 = vsel %vm1311_vm7, %v1479_v38, %v1478_v10  ;;  %v1334_v26 = vperm.slane %v3898_v52, %v3738_v9 }
 0x35c   : > { %v1496_v22 = vsel %vm1362_vm11, %v1474_v44, %v1495_v25  ;;  %v1346_v44 = vperm.slane %v3941_v48, %v3738_v9  ;;  %v1342_v6 = vsel %vm1311_vm7, %v1341_v47, %v1340_v30  ;;  %v2720_v30 = vld [vmem:[%s4412_s5 + $0x98] sm:$0xff] }
 0x35d   : > { %v1483_v24 = vsel %vm1311_vm7, %v1482_v36, %v1481_v50  ;;  %v1497_v51 = vsel %vm1364_vm12, %v1477_v14, %v1496_v22  ;;  %v1338_v36 = vperm.slane %v3913_v60, %v3743_v59  ;;  %v1336_v60 = vsel %vm1311_vm7, %v1335_v11, %v1334_v26 }
 0x35e   : > { %v1345_v14 = vsel %vm1311_vm7, %v1344_v18, %v1343_v42  ;;  %v1349_v50 = vperm.slane %v1250_v7, %v3738_v9  ;;  %v1348_v48 = vsel %vm1311_vm7, %v1347_v16, %v1346_v44  ;;  %v2706_v42 = vld [vmem:[%s4412_s5 + $0x18] sm:$0xff]  ;;  %v2719_v44 = vld [vmem:[%s4412_s5 + $0x90] sm:$0xff] }
 0x35f   : > { %v1130_v45 = vpop.xlane.xlu2 %1129  ;;  %v1339_v38 = vsel %vm1311_vm7, %v1338_v36, %v1337_v43  ;;  %v1259_v34 = vpop.xlane.xlu0 %1258 }
 0x360   : > { %v1169_v13 = vmul.f32 %v3802_v27, %v1130_v45  ;;  %v1127_v53 = vpop.xlane.xlu1 %1126  ;;  %v1498_v45 = vsel %vm1366_vm13, %v1480_v4, %v1497_v51  ;;  %v1353_v22 = vperm.slane %v1259_v34, %v3743_v59 }
 0x361   : > { %v1168_v63 = vmul.f32 %v3802_v27, %v1127_v53  ;;  %v1499_v27 = vsel %vm1368_vm14, %v1483_v24, %v1498_v45 }
 0x362   : > { %v1485_v23 = vperm.slane %v1169_v13, %v3743_v59  ;;  %v1372_v13 = vsel %vm1358_vm8, %v1339_v38, %v1336_v60 }
 0x363   : > { %v1484_v58 = vperm.slane %v1168_v63, %v3738_v9  ;;  %v1373_v25 = vsel %vm1360_vm10, %v1342_v6, %v1372_v13  ;;  %v2713_v13 = vld [vmem:[%s4413_s6 + $0x10] sm:$0xff] }
 0x364   : > { %v1374_v63 = vsel %vm1362_vm11, %v1345_v14, %v1373_v25  ;;  %v2732_v25 = vld [vmem:[%s4412_s5 + $0xa8] sm:$0xff] }
 0x365   : > { %v1486_v54 = vsel %vm1311_vm7, %v1485_v23, %v1484_v58  ;;  %v1375_v2 = vsel %vm1364_vm12, %v1348_v48, %v1374_v63  ;;  %v2718_v48 = vld [vmem:[%s4412_s5 + $0x28] sm:$0xff]  ;;  %v2714_v63 = vld [vmem:[%s4413_s6 + $0x18] sm:$0xff] }
 0x366   : > { %v3991_v10 = vsel %vm1370_vm15, %v1486_v54, %v1499_v27 }
 0x367   : > { %2702 = vmatmul.msk.f32.gmra.mxu3 %vm1379_vm1, %v3991_v10  ;;  %v1256_v33 = vpop.xlane.xlu2 %1255 }
 0x368   : > { %v1253_v52 = vpop.xlane.xlu1 %1252  ;;  %v1352_v53 = vperm.slane %v1256_v33, %v3738_v9  ;;  %v2705_v33 = vld [vmem:[%s4412_s5 + $0x10] sm:$0xff] }
 0x369   : > { %v1350_v21 = vperm.slane %v1253_v52, %v3743_v59  ;;  %v1529_v52 = vld [vmem:[%s4413_s6 + $0x8] sm:$0xff] }
 0x36a   : > { %v1354_v24 = vsel %vm1311_vm7, %v1353_v22, %v1352_v53  ;;  %v2717_v53 = vld [vmem:[%s4412_s5 + $0x20] sm:$0xff]  ;;  %v1267_v22 = vstv %s1266_s27  ;;  %s2432_s27 = sshll.u32 %s4238_s22, 4  ;;  %s2433_s27 = int_to_ptr.vmem [resolvable:$true] %s2432_s27 }
 0x36b   : > { %v1351_v4 = vsel %vm1311_vm7, %v1350_v21, %v1349_v50 }
 0x36c   : > { %v1376_v23 = vsel %vm1366_vm13, %v1351_v4, %v1375_v2  ;;  %v2731_v4 = vld [vmem:[%s4412_s5 + $0xa0] sm:$0xff] }
 0x36d   : > { %v1377_v43 = vsel %vm1368_vm14, %v1354_v24, %v1376_v23 }
 0x36f   : > { %2709 = vmatmul.msk.f32.vlgmr.msra.gmra.mxu3 %vm1379_vm1, %v3909_v5  ;;  %v1265_v7 = vpop.xlane.xlu2 %1264 }
 0x370   : > { %v1356_v51 = vperm.slane %v1265_v7, %v3743_v59  ;;  %v1262_v58 = vpop.xlane.xlu1 %1261 }
 0x371   : > { %v1355_v45 = vperm.slane %v1262_v58, %v3738_v9  ;;  %v1528_v9 = vld [vmem:[%s4413_s6] sm:$0xff] }
 0x373   : > { %v1357_v11 = vsel %vm1311_vm7, %v1356_v51, %v1355_v45 }
 0x374   : > { %v4032_v27 = vsel %vm1370_vm15, %v1357_v11, %v1377_v43 }
 0x375   : > { %2700 = vmatmul.msk.f32.gmra.mxu2 %vm1379_vm1, %v4032_v27 }
 0x377   : > { %2710 = vmatmul.msk.f32.gmra.mxu3 %vm1379_vm1, %v4032_v27 }
 0x391   : > { %v1522_v54 = vpop.f32.mrf.mxu3 }
 0x3b0   : > { %v1401_v47 = vpop.f32.mrf.mxu2 }
 0x3b1   : > { %v1523_v18 = vadd.f32 %v1522_v54, %v1401_v47 }
 0x3ea   : > { %v1525_v26 = vpop.f32.mrf.mxu3 }
 0x3f2   : > { %v1584_v21 = vpop.f32.mrf.mxu3 }
 0x3f8   : > { %v1404_v59 = vpop.f32.mrf.mxu2 }
 0x3f9   : > { %v1526_v36 = vadd.f32 %v1525_v26, %v1404_v59  ;;  %v2725_v59 = vld [vmem:[%s4413_s6 + $0x20] sm:$0xff] }
 0x3fa   : > { %v1587_v16 = vpop.f32.mrf.mxu3 }
 0x3fb   : > { %1550 = vmatpush.msra.mxu2 %v1526_v36  ;;  %v2730_v36 = vld [vmem:[%s4412_s5 + $0x38] sm:$0xff] }
 0x3fd   : > { %1551 = vmatpush.msra.mxu2 %v1523_v18  ;;  %v2729_v18 = vld [vmem:[%s4412_s5 + $0x30] sm:$0xff] }
 0x3fe   : > { %2703 = vmatmul.msk.f32.vlgmr.msra.gmra.mxu2 %vm1379_vm1, %v1528_v9  ;;  %v2744_v9 = vld [vmem:[%s4412_s5 + $0xb8] sm:$0xff] }
 0x3ff   : > { %1604 = vmatpush.msrb.mxu2 %v2706_v42  ;;  %v2743_v42 = vld [vmem:[%s4412_s5 + $0xb0] sm:$0xff] }
 0x401   : > { %1605 = vmatpush.msrb.mxu2 %v2705_v33  ;;  %v2726_v33 = vld [vmem:[%s4413_s6 + $0x28] sm:$0xff] }
 0x403   : > { %1667 = vmatpush.msra.mxu2 %v2720_v30 }
 0x405   : > { %1668 = vmatpush.msra.mxu2 %v2719_v44 }
 0x406   : > { %2704 = vmatmul.msk.f32.gmra.mxu2 %vm1379_vm1, %v1529_v52 }
 0x40e   : > { %2711 = vmatmul.msk.f32.vlgmr.msrb.gmra.mxu2 %vm1379_vm1, %v3865_v55 }
 0x416   : > { %2712 = vmatmul.msk.f32.gmra.mxu2 %vm1379_vm1, %v3991_v10 }
 0x41e   : > { %2721 = vmatmul.msk.f32.vlgmr.msra.gmra.mxu2 %vm1379_vm1, %v3909_v5 }
 0x426   : > { %2722 = vmatmul.msk.f32.gmra.mxu2 %vm1379_vm1, %v4032_v27 }
 0x481   : > { %v1553_v38 = vpop.f32.mrf.mxu2 }
 0x482   : > { %v1559_v2 = vadd.f32 %v1553_v38, %v1267_v22 }
 0x489   : > { %v1556_v60 = vpop.f32.mrf.mxu2 }
 0x48a   : > { %v1560_v23 = vadd.f32 %v1556_v60, %v1267_v22 }
 0x491   : > { %v1607_v6 = vpop.f32.mrf.mxu2 }
 0x492   : > { %v1608_v34 = vadd.f32 %v1607_v6, %v1584_v21 }
 0x499   : > { %v1610_v14 = vpop.f32.mrf.mxu2 }
 0x49a   : > { %v1611_v50 = vadd.f32 %v1610_v14, %v1587_v16 }
 0x49c   : > { %1636 = vmatpush.msrb.mxu3 %v1611_v50 }
 0x49e   : > { %1637 = vmatpush.msrb.mxu3 %v1608_v34  ;;  %v2737_v34 = vld [vmem:[%s4413_s6 + $0x30] sm:$0xff] }
 0x49f   : > { %2715 = vmatmul.msk.f32.vlgmr.msrb.gmra.mxu3 %vm1379_vm1, %v2713_v13  ;;  %v2742_v13 = vld [vmem:[%s4412_s5 + $0x48] sm:$0xff] }
 0x4a0   : > { %1690 = vmatpush.msra.mxu3 %v2718_v48  ;;  %v2741_v48 = vld [vmem:[%s4412_s5 + $0x40] sm:$0xff] }
 0x4a1   : > { %v1670_v45 = vpop.f32.mrf.mxu2 }
 0x4a2   : > { %1691 = vmatpush.msra.mxu3 %v2717_v53  ;;  %v2756_v53 = vld [vmem:[%s4412_s5 + $0xc8] sm:$0xff] }
 0x4a4   : > { %1753 = vmatpush.msrb.mxu3 %v2732_v25  ;;  %v2755_v25 = vld [vmem:[%s4412_s5 + $0xc0] sm:$0xff] }
 0x4a6   : > { %1754 = vmatpush.msrb.mxu3 %v2731_v4  ;;  %v2738_v4 = vld [vmem:[%s4413_s6 + $0x38] sm:$0xff] }
 0x4a7   : > { %2716 = vmatmul.msk.f32.gmra.mxu3 %vm1379_vm1, %v2714_v63 }
 0x4a9   : > { %v1673_v11 = vpop.f32.mrf.mxu2 }
 0x4af   : > { %2723 = vmatmul.msk.f32.vlgmr.msra.gmra.mxu3 %vm1379_vm1, %v3865_v55 }
 0x4b7   : > { %2724 = vmatmul.msk.f32.gmra.mxu3 %vm1379_vm1, %v3991_v10 }
 0x4bf   : > { %2733 = vmatmul.msk.f32.vlgmr.msrb.gmra.mxu3 %vm1379_vm1, %v3909_v5 }
 0x4c7   : > { %2734 = vmatmul.msk.f32.gmra.mxu3 %vm1379_vm1, %v4032_v27 }
 0x522   : > { %v1639_v7 = vpop.f32.mrf.mxu3 }
 0x523   : > { %v1645_v24 = vadd.f32 %v1639_v7, %v1559_v2 }
 0x52a   : > { %v1642_v51 = vpop.f32.mrf.mxu3 }
 0x52b   : > { %v1646_v58 = vadd.f32 %v1642_v51, %v1560_v23 }
 0x532   : > { %v1693_v43 = vpop.f32.mrf.mxu3 }
 0x533   : > { %v1694_v26 = vadd.f32 %v1693_v43, %v1670_v45 }
 0x53a   : > { %v1696_v54 = vpop.f32.mrf.mxu3 }
 0x53b   : > { %v1697_v47 = vadd.f32 %v1696_v54, %v1673_v11  ;;  %v2749_v11 = vld [vmem:[%s4413_s6 + $0x40] sm:$0xff]  ;;  %v2754_v54 = vld [vmem:[%s4412_s5 + $0x58] sm:$0xff] }
 0x53d   : > { %1722 = vmatpush.msrb.mxu2 %v1697_v47  ;;  %v2753_v47 = vld [vmem:[%s4412_s5 + $0x50] sm:$0xff] }
 0x53f   : > { %1723 = vmatpush.msrb.mxu2 %v1694_v26  ;;  %v2768_v26 = vld [vmem:[%s4412_s5 + $0xd8] sm:$0xff] }
 0x540   : > { %2727 = vmatmul.msk.f32.vlgmr.msrb.gmra.mxu2 %vm1379_vm1, %v2725_v59  ;;  %v2767_v59 = vld [vmem:[%s4412_s5 + $0xd0] sm:$0xff] }
 0x541   : > { %1776 = vmatpush.msra.mxu2 %v2730_v36  ;;  %v2750_v36 = vld [vmem:[%s4413_s6 + $0x48] sm:$0xff] }
 0x542   : > { %v1756_v60 = vpop.f32.mrf.mxu3 }
 0x543   : > { %1777 = vmatpush.msra.mxu2 %v2729_v18 }
 0x545   : > { %1839 = vmatpush.msrb.mxu2 %v2744_v9 }
 0x547   : > { %1840 = vmatpush.msrb.mxu2 %v2743_v42 }
 0x548   : > { %2728 = vmatmul.msk.f32.gmra.mxu2 %vm1379_vm1, %v2726_v33 }
 0x54a   : > { %v1759_v6 = vpop.f32.mrf.mxu3 }
 0x550   : > { %2735 = vmatmul.msk.f32.vlgmr.msra.gmra.mxu2 %vm1379_vm1, %v3865_v55 }
 0x558   : > { %2736 = vmatmul.msk.f32.gmra.mxu2 %vm1379_vm1, %v3991_v10 }
 0x560   : > { %2745 = vmatmul.msk.f32.vlgmr.msrb.gmra.mxu2 %vm1379_vm1, %v3909_v5 }
 0x568   : > { %2746 = vmatmul.msk.f32.gmra.mxu2 %vm1379_vm1, %v4032_v27 }
 0x5c3   : > { %v1725_v30 = vpop.f32.mrf.mxu2 }
 0x5c4   : > { %v1731_v44 = vadd.f32 %v1725_v30, %v1645_v24 }
 0x5cb   : > { %v1728_v52 = vpop.f32.mrf.mxu2 }
 0x5cc   : > { %v1732_v38 = vadd.f32 %v1728_v52, %v1646_v58 }
 0x5d3   : > { %v1779_v21 = vpop.f32.mrf.mxu2 }
 0x5d4   : > { %v1780_v50 = vadd.f32 %v1779_v21, %v1756_v60 }
 0x5db   : > { %v1782_v16 = vpop.f32.mrf.mxu2 }
 0x5dc   : > { %v1783_v14 = vadd.f32 %v1782_v16, %v1759_v6  ;;  %v2761_v6 = vld [vmem:[%s4413_s6 + $0x50] sm:$0xff]  ;;  %v2762_v16 = vld [vmem:[%s4413_s6 + $0x58] sm:$0xff] }
 0x5de   : > { %1808 = vmatpush.msra.mxu3 %v1783_v14 }
 0x5e0   : > { %1809 = vmatpush.msra.mxu3 %v1780_v50 }
 0x5e1   : > { %2739 = vmatmul.msk.f32.vlgmr.msra.gmra.mxu3 %vm1379_vm1, %v2737_v34 }
 0x5e2   : > { %1862 = vmatpush.msrb.mxu3 %v2742_v13 }
 0x5e3   : > { %v1842_v24 = vpop.f32.mrf.mxu2 }
 0x5e4   : > { %1863 = vmatpush.msrb.mxu3 %v2741_v48 }
 0x5e6   : > { %1925 = vmatpush.msra.mxu3 %v2756_v53 }
 0x5e8   : > { %1926 = vmatpush.msra.mxu3 %v2755_v25 }
 0x5e9   : > { %2740 = vmatmul.msk.f32.gmra.mxu3 %vm1379_vm1, %v2738_v4 }
 0x5eb   : > { %v1845_v51 = vpop.f32.mrf.mxu2 }
 0x5f1   : > { %2747 = vmatmul.msk.f32.vlgmr.msrb.gmra.mxu3 %vm1379_vm1, %v3865_v55 }
 0x5f9   : > { %2748 = vmatmul.msk.f32.gmra.mxu3 %vm1379_vm1, %v3991_v10 }
 0x601   : > { %2757 = vmatmul.msk.f32.vlgmr.msra.gmra.mxu3 %vm1379_vm1, %v3909_v5 }
 0x609   : > { %2758 = vmatmul.msk.f32.gmra.mxu3 %vm1379_vm1, %v4032_v27 }
 0x664   : > { %v1811_v63 = vpop.f32.mrf.mxu3 }
 0x665   : > { %v1817_v22 = vadd.f32 %v1811_v63, %v1731_v44 }
 0x66c   : > { %v1814_v2 = vpop.f32.mrf.mxu3 }
 0x66d   : > { %v1818_v7 = vadd.f32 %v1814_v2, %v1732_v38  ;;  %v2773_v2 = vld [vmem:[%s4413_s6 + $0x60] sm:$0xff] }
 0x674   : > { %v1865_v23 = vpop.f32.mrf.mxu3 }
 0x675   : > { %v1866_v43 = vadd.f32 %v1865_v23, %v1842_v24  ;;  %v4499_v23 = vlaneseq }
 0x67c   : > { %v1868_v58 = vpop.f32.mrf.mxu3 }
 0x67d   : > { %v1869_v45 = vadd.f32 %v1868_v58, %v1845_v51  ;;  %v4205_v51 = vshrl.u32 %v4499_v23, 7 }
 0x67f   : > { %1894 = vmatpush.msra.mxu2 %v1869_v45  ;;  %2895 = vset.pattern.permute.xlu2 %v4205_v51  ;;  %v4210_v58 = vadd.s32 8, %v4205_v51 }
 0x680   : > { %2893 = vset.pattern.permute.xlu0 %v4205_v51 }
 0x681   : > { %1895 = vmatpush.msra.mxu2 %v1866_v43  ;;  %2894 = vset.pattern.permute.xlu1 %v4210_v58 }
 0x682   : > { %2751 = vmatmul.msk.f32.vlgmr.msra.gmra.mxu2 %vm1379_vm1, %v2749_v11 }
 0x683   : > { %1948 = vmatpush.msrb.mxu2 %v2754_v54 }
 0x684   : > { %v1928_v30 = vpop.f32.mrf.mxu3 }
 0x685   : > { %1949 = vmatpush.msrb.mxu2 %v2753_v47 }
 0x687   : > { %2011 = vmatpush.msra.mxu2 %v2768_v26 }
 0x689   : > { %2012 = vmatpush.msra.mxu2 %v2767_v59 }
 0x68a   : > { %2752 = vmatmul.msk.f32.gmra.mxu2 %vm1379_vm1, %v2750_v36 }
 0x68c   : > { %v1931_v52 = vpop.f32.mrf.mxu3 }
 0x692   : > { %2759 = vmatmul.msk.f32.vlgmr.msrb.gmra.mxu2 %vm1379_vm1, %v3865_v55 }
 0x69a   : > { %2760 = vmatmul.msk.f32.gmra.mxu2 %vm1379_vm1, %v3991_v10 }
 0x6a2   : > { %2769 = vmatmul.msk.f32.vlgmr.msra.gmra.mxu2 %vm1379_vm1, %v3909_v5  ;;  %v2766_v5 = vld [vmem:[%s4412_s5 + $0x68] sm:$0xff] }
 0x6aa   : > { %2770 = vmatmul.msk.f32.gmra.mxu2 %vm1379_vm1, %v4032_v27  ;;  %v2765_v27 = vld [vmem:[%s4412_s5 + $0x60] sm:$0xff] }
 0x705   : > { %v1897_v18 = vpop.f32.mrf.mxu2 }
 0x706   : > { %v1903_v9 = vadd.f32 %v1897_v18, %v1817_v22 }
 0x70d   : > { %v1900_v42 = vpop.f32.mrf.mxu2 }
 0x70e   : > { %v1904_v33 = vadd.f32 %v1900_v42, %v1818_v7 }
 0x715   : > { %v1951_v44 = vpop.f32.mrf.mxu2 }
 0x716   : > { %v1952_v21 = vadd.f32 %v1951_v44, %v1928_v30 }
 0x71d   : > { %v1954_v38 = vpop.f32.mrf.mxu2 }
 0x71e   : > { %v1955_v60 = vadd.f32 %v1954_v38, %v1931_v52 }
 0x720   : > { %1980 = vmatpush.msrb.mxu3 %v1955_v60 }
 0x722   : > { %1981 = vmatpush.msrb.mxu3 %v1952_v21 }
 0x723   : > { %2763 = vmatmul.msk.f32.vlgmr.msrb.gmra.mxu3 %vm1379_vm1, %v2761_v6 }
 0x724   : > { %2034 = vmatpush.msra.mxu3 %v2766_v5 }
 0x725   : > { %v2014_v48 = vpop.f32.mrf.mxu2 }
 0x726   : > { %2035 = vmatpush.msra.mxu3 %v2765_v27 }
 0x72b   : > { %2764 = vmatmul.msk.f32.gmra.mxu3 %vm1379_vm1, %v2762_v16 }
 0x72d   : > { %v2017_v25 = vpop.f32.mrf.mxu2 }
 0x733   : > { %2771 = vmatmul.msk.f32.vlgmr.msra.gmra.mxu3 %vm1379_vm1, %v3865_v55  ;;  %v2774_v55 = vld [vmem:[%s4413_s6 + $0x68] sm:$0xff] }
 0x73b   : > { %2772 = vmatmul.msk.f32.gmra.mxu3 %vm1379_vm1, %v3991_v10 }
 0x7a6   : > { %v1983_v14 = vpop.f32.mrf.mxu3 }
 0x7a7   : > { %v1989_v50 = vadd.f32 %v1983_v14, %v1903_v9 }
 0x7ae   : > { %v1986_v34 = vpop.f32.mrf.mxu3 }
 0x7af   : > { %v1990_v13 = vadd.f32 %v1986_v34, %v1904_v33 }
 0x7b6   : > { %v2037_v53 = vpop.f32.mrf.mxu3 }
 0x7b7   : > { %v2038_v22 = vadd.f32 %v2037_v53, %v2014_v48 }
 0x7be   : > { %v2040_v4 = vpop.f32.mrf.mxu3 }
 0x7bf   : > { %v2041_v63 = vadd.f32 %v2040_v4, %v2017_v25 }
 0x7c1   : > { %2066 = vmatpush.msrb.mxu2 %v2041_v63 }
 0x7c3   : > { %2067 = vmatpush.msrb.mxu2 %v2038_v22 }
 0x7c4   : > { %2775 = vmatmul.msk.f32.vlgmr.msrb.gmra.mxu2 %vm1379_vm1, %v2773_v2 }
 0x7cc   : > { %2776 = vmatmul.msk.f32.gmra.mxu2 %vm1379_vm1, %v2774_v55 }
 0x847   : > { %v2069_v10 = vpop.f32.mrf.mxu2 }
 0x848   : > { %v2075_v7 = vadd.f32 %v2069_v10, %v1989_v50 }
 0x84a   : > { %v2777_v24 = vmul.f32 -1.442695, %v2075_v7 }
 0x84c   : > { %2922 = vpow2.f32 %v2777_v24 }
 0x84f   : > { %v2072_v18 = vpop.f32.mrf.mxu2 }
 0x850   : > { %v2076_v33 = vadd.f32 %v2072_v18, %v1990_v13 }
 0x852   : > { %v2923_v45 = vpop.eup %2922  ;;  %v2778_v60 = vmul.f32 -1.442695, %v2076_v33 }
 0x853   : > { %v2083_v43 = vadd.f32 1.0, %v2923_v45 }
 0x855   : > { %2924 = vrcp.f32 %v2083_v43  ;;  %v2096_v26 = vand.u32 2147483648, %v2083_v43  ;;  %v2094_v36 = vand.u32 2147483647, %v2083_v43  ;;  %vm2090_vm3 = vweird.f32 %v2083_v43 }
 0x856   : > { %2926 = vpow2.f32 %v2778_v60 }
 0x857   : > { %v2097_v42 = vor.u32 1.1754944e-38, %v2096_v26  ;;  %vm2095_vm5 = vcmp.eq.f32.partialorder %v2094_v36, 8.507059e+37 }
 0x85b   : > { %v2925_v11 = vpop.eup %2924 }
 0x85c   : > { %v2086_v54 = vmul.f32 %v2925_v11, %v2083_v43  ;;  %vm2091_vm2 = vweird.f32 %v2925_v11  ;;  %v2927_v21 = vpop.eup %2926 }
 0x85d   : > { %vm2092_vm4 = vmor %vm2090_vm3, %vm2091_vm2  ;;  %v2084_v6 = vadd.f32 1.0, %v2927_v21 }
 0x85e   : > { %v2087_v47 = vsub.f32 1.0, %v2086_v54 }
 0x85f   : > { %2928 = vrcp.f32 %v2084_v6  ;;  %v2111_v53 = vand.u32 2147483648, %v2084_v6  ;;  %vm2105_vm7 = vweird.f32 %v2084_v6  ;;  %v2109_v4 = vand.u32 2147483647, %v2084_v6 }
 0x860   : > { %v2088_v59 = vmul.f32 %v2925_v11, %v2087_v47 }
 0x861   : > { %v2112_v22 = vor.u32 1.1754944e-38, %v2111_v53  ;;  %vm2110_vm9 = vcmp.eq.f32.partialorder %v2109_v4, 8.507059e+37 }
 0x862   : > { %v2089_v9 = vadd.f32 %v2925_v11, %v2088_v59 }
 0x864   : > { %v2093_v30 = vsel %vm2092_vm4, %v2925_v11, %v2089_v9 }
 0x865   : > { %v2098_v44 = vsel %vm2095_vm5, %v2097_v42, %v2093_v30  ;;  %v2929_v16 = vpop.eup %2928 }
 0x866   : > { %v2128_v52 = vperm.slane %v2098_v44, 1  ;;  %v2115_v38 = vperm.slane %v2098_v44, 0  ;;  %v2141_v5 = vperm.slane %v2098_v44, 2  ;;  %v2154_v27 = vperm.slane %v2098_v44, 3 }
 0x867   : > { %v2101_v14 = vmul.f32 %v2929_v16, %v2084_v6  ;;  %v2193_v34 = vperm.slane %v2098_v44, 6  ;;  %vm2106_vm6 = vweird.f32 %v2929_v16  ;;  %v2167_v25 = vperm.slane %v2098_v44, 4 }
 0x868   : > { %2133 = vperm.xlu2 %2895, %v2128_v52   ;;  %2126 = vperm.xlu1 %2894, %v2115_v38   ;;  %vm2107_vm8 = vmor %vm2105_vm7, %vm2106_vm6  ;;  %v2180_v55 = vperm.slane %v2098_v44, 5  ;;  %v2206_v7 = vperm.slane %v2098_v44, 7 }
 0x869   : > { %2120 = vperm.xlu0 %2893, %v2115_v38   ;;  %v2102_v50 = vsub.f32 1.0, %v2101_v14  ;;  %v4501_v14 = vld [vmem:[#allocation6_spill] sm:$0xff] }
 0x86b   : > { %v2103_v13 = vmul.f32 %v2929_v16, %v2102_v50 }
 0x86d   : > { %v2104_v48 = vadd.f32 %v2929_v16, %v2103_v13 }
 0x86f   : > { %v2108_v63 = vsel %vm2107_vm8, %v2929_v16, %v2104_v48  ;;  %v4503_v48 = vld [vmem:[#allocation27_spill] sm:$0xff] }
 0x870   : > { %2896 = vset.pattern.permute.xlu2 %v4210_v58  ;;  %2897 = vset.pattern.permute.xlu1 %v4205_v51  ;;  %v4220_v2 = vsel %vm2110_vm9, %v2112_v22, %v2108_v63  ;;  %v4505_v63 = vld [vmem:[#allocation10_spill] sm:$0xff]  ;;  %v4506_v22 = vld [vmem:[#allocation7_spill] sm:$0xff] }
 0x871   : > { %2898 = vset.pattern.permute.xlu0 %v4210_v58  ;;  %v2219_v10 = vperm.slane %v4220_v2, 0  ;;  %v2258_v24 = vperm.slane %v4220_v2, 3  ;;  %v2284_v23 = vperm.slane %v4220_v2, 5  ;;  %v2232_v45 = vperm.slane %v4220_v2, 1 }
 0x872   : > { %v2245_v47 = vperm.slane %v4220_v2, 2  ;;  %v2271_v59 = vperm.slane %v4220_v2, 4  ;;  %v2297_v60 = vperm.slane %v4220_v2, 6 }
 0x878   : > { %2139 = vperm.xlu2 %2896, %v2128_v52   ;;  %2146 = vperm.xlu1 %2897, %v2141_v5  }
 0x879   : > { %2165 = vperm.xlu0 %2898, %v2154_v27  }
 0x880   : > { %2152 = vperm.xlu2 %2896, %v2141_v5   ;;  %2159 = vperm.xlu1 %2897, %v2154_v27   ;;  %v4500_v27 = vld [vmem:[#allocation8_spill] sm:$0xff] }
 0x881   : > { %2901 = vset.pattern.permute.xlu0 %v4205_v51 }
 0x888   : > { %2899 = vset.pattern.permute.xlu2 %v4205_v51  ;;  %2900 = vset.pattern.permute.xlu1 %v4210_v58 }
 0x889   : > { %2198 = vperm.xlu0 %2901, %v2193_v34  }
 0x890   : > { %2172 = vperm.xlu2 %2899, %v2167_v25   ;;  %2178 = vperm.xlu1 %2900, %v2167_v25  }
 0x891   : > { %2904 = vset.pattern.permute.xlu0 %v4210_v58 }
 0x898   : > { %2185 = vperm.xlu2 %2899, %v2180_v55   ;;  %2191 = vperm.xlu1 %2900, %v2180_v55   ;;  %v4507_v55 = vld [vmem:[#allocation12_spill] sm:$0xff] }
 0x899   : > { %2230 = vperm.xlu0 %2904, %v2219_v10  }
 0x8a0   : > { %2902 = vset.pattern.permute.xlu2 %v4210_v58  ;;  %2903 = vset.pattern.permute.xlu1 %v4205_v51 }
 0x8a1   : > { %2907 = vset.pattern.permute.xlu0 %v4205_v51 }
 0x8a8   : > { %2204 = vperm.xlu2 %2902, %v2193_v34   ;;  %2211 = vperm.xlu1 %2903, %v2206_v7   ;;  %v4502_v34 = vld [vmem:[#allocation28_spill] sm:$0xff] }
 0x8a9   : > { %2263 = vperm.xlu0 %2907, %v2258_v24  }
 0x8b0   : > { %2217 = vperm.xlu2 %2902, %v2206_v7   ;;  %2224 = vperm.xlu1 %2903, %v2219_v10  }
 0x8b1   : > { %2910 = vset.pattern.permute.xlu0 %v4210_v58 }
 0x8b8   : > { %2905 = vset.pattern.permute.xlu2 %v4205_v51  ;;  %2906 = vset.pattern.permute.xlu1 %v4210_v58 }
 0x8b9   : > { %2295 = vperm.xlu0 %2910, %v2284_v23  }
 0x8c0   : > { %2237 = vperm.xlu2 %2905, %v2232_v45   ;;  %2243 = vperm.xlu1 %2906, %v2232_v45  }
 0x8c2   : > { %v2134_v43 = vpop.permute.xlu2 %2133 }
 0x8c3   : > { %v2325_v11 = vmul.f32 %v2134_v43, %v3505_v1  ;;  %v4509_v43 = vld [vmem:[#allocation34_spill] sm:$0xff] }
 0x8c5   : > { %v2357_v54 = vadd.f32 %v2325_v11, %v3205_v29 }
 0x8c7   : > { %2389 = vst.msk [vmem:[%s4238_s22 + $0x10] sm:$0xff] %vm807_vm0, %v2357_v54 }
 0x8c8   : > { %2250 = vperm.xlu2 %2905, %v2245_v47   ;;  %2256 = vperm.xlu1 %2906, %v2245_v47   ;;  %v4510_v47 = vld [vmem:[#allocation37_spill] sm:$0xff] }
 0x8d0   : > { %2908 = vset.pattern.permute.xlu2 %v4210_v58  ;;  %2909 = vset.pattern.permute.xlu1 %v4205_v51 }
 0x8d2   : > { %v2140_v26 = vpop.permute.xlu2 %2139 }
 0x8d3   : > { %v2326_v1 = vmul.f32 %v2140_v26, %v3523_v15 }
 0x8d5   : > { %v2358_v29 = vadd.f32 %v2326_v1, %v3210_v37  ;;  %v4511_v1 = vld [vmem:[#allocation9_spill] sm:$0xff] }
 0x8d7   : > { %2390 = vst.msk [vmem:[%s4238_s22 + $0x18] sm:$0xff] %vm807_vm0, %v2358_v29 }
 0x8d8   : > { %2269 = vperm.xlu2 %2908, %v2258_v24   ;;  %2276 = vperm.xlu1 %2909, %v2271_v59  }
 0x8da   : > { %v2153_v36 = vpop.permute.xlu2 %2152  ;;  %v2127_v18 = vpop.permute.xlu1 %2126 }
 0x8db   : > { %v2328_v9 = vmul.f32 %v2153_v36, %v3541_v56  ;;  %v2324_v42 = vmul.f32 %v2127_v18, %v3527_v46  ;;  %v2121_v33 = vpop.permute.xlu0 %2120  ;;  %v4513_v18 = vld [vmem:[#allocation17_spill] sm:$0xff] }
 0x8dc   : > { %v2323_v30 = vmul.f32 %v2121_v33, %v3509_v62 }
 0x8dd   : > { %v2360_v15 = vadd.f32 %v2328_v9, %v3224_v57  ;;  %v2356_v37 = vadd.f32 %v2324_v42, %v3196_v17 }
 0x8de   : > { %v2355_v44 = vadd.f32 %v2323_v30, %v3193_v12  ;;  %v4514_v30 = vld [vmem:[#allocation35_spill] sm:$0xff] }
 0x8df   : > { %2392 = vst.msk [vmem:[%s4238_s22 + $0x28] sm:$0xff] %vm807_vm0, %v2360_v15 }
 0x8e0   : > { %2388 = vst.msk [vmem:[%s4238_s22 + $0x8] sm:$0xff] %vm807_vm0, %v2356_v37  ;;  %2282 = vperm.xlu2 %2908, %v2271_v59   ;;  %2289 = vperm.xlu1 %2909, %v2284_v23   ;;  %v4508_v23 = vld [vmem:[#allocation29_spill] sm:$0xff]  ;;  %v4515_v37 = vld [vmem:[#allocation31_spill] sm:$0xff] }
 0x8e1   : > { %2387 = vst.msk [vmem:[%s4238_s22] sm:$0xff] %vm807_vm0, %v2355_v44  ;;  %v4512_v59 = vld [vmem:[#allocation13_spill] sm:$0xff] }
 0x8e8   : > { %2911 = vset.pattern.permute.xlu2 %v4205_v51  ;;  %2912 = vset.pattern.permute.xlu1 %v4210_v58  ;;  %v2310_v58 = vperm.slane %v4220_v2, 7 }
 0x8ea   : > { %v2173_v57 = vpop.permute.xlu2 %2172  ;;  %v2147_v62 = vpop.permute.xlu1 %2146 }
 0x8eb   : > { %v2331_v17 = vmul.f32 %v2173_v57, %v3565_v19  ;;  %v2327_v12 = vmul.f32 %v2147_v62, %v3501_v28  ;;  %v2166_v46 = vpop.permute.xlu0 %2165  ;;  %v4516_v57 = vld [vmem:[#allocation15_spill] sm:$0xff] }
 0x8ec   : > { %v2330_v56 = vmul.f32 %v2166_v46, %v3519_v61 }
 0x8ed   : > { %v2363_v52 = vadd.f32 %v2331_v17, %v3241_v20  ;;  %v2359_v38 = vadd.f32 %v2327_v12, %v3219_v49  ;;  %v4517_v17 = vld [vmem:[#allocation11_spill] sm:$0xff] }
 0x8ee   : > { %v2362_v51 = vadd.f32 %v2330_v56, %v3234_v8  ;;  %v4518_v56 = vld [vmem:[#allocation38_spill] sm:$0xff] }
 0x8ef   : > { %2395 = vst.msk [vmem:[%s4238_s22 + $0x40] sm:$0xff] %vm807_vm0, %v2363_v52 }
 0x8f0   : > { %2391 = vst.msk [vmem:[%s4238_s22 + $0x20] sm:$0xff] %vm807_vm0, %v2359_v38  ;;  %2302 = vperm.xlu2 %2911, %v2297_v60   ;;  %2308 = vperm.xlu1 %2912, %v2297_v60   ;;  %v4519_v38 = vld [vmem:[#allocation26_spill] sm:$0xff] }
 0x8f1   : > { %2394 = vst.msk [vmem:[%s4238_s22 + $0x38] sm:$0xff] %vm807_vm0, %v2362_v51 }
 0x8f2   : > { %v2186_v28 = vpop.permute.xlu2 %2185  ;;  %v2160_v61 = vpop.permute.xlu1 %2159 }
 0x8f3   : > { %v2333_v20 = vmul.f32 %v2186_v28, %v3561_v39  ;;  %v2329_v49 = vmul.f32 %v2160_v61, %v3537_v31  ;;  %v4520_v61 = vld [vmem:[#allocation36_spill] sm:$0xff] }
 0x8f5   : > { %v2365_v19 = vadd.f32 %v2333_v20, %v3249_v32  ;;  %v2361_v8 = vadd.f32 %v2329_v49, %v3231_v3  ;;  %v4521_v49 = vld [vmem:[#allocation33_spill] sm:$0xff] }
 0x8f7   : > { %2397 = vst.msk [vmem:[%s4238_s22 + $0x50] sm:$0xff] %vm807_vm0, %v2365_v19 }
 0x8f8   : > { %2393 = vst.msk [vmem:[%s4238_s22 + $0x30] sm:$0xff] %vm807_vm0, %v2361_v8  ;;  %2315 = vperm.xlu2 %2911, %v2310_v58   ;;  %2321 = vperm.xlu1 %2912, %v2310_v58   ;;  %v4522_v8 = vld [vmem:[#allocation18_spill] sm:$0xff] }
 0x8fb   : > { %v2199_v21 = vpop.permute.xlu0 %2198 }
 0x8fc   : > { %v2335_v6 = vmul.f32 %v2199_v21, %v3599_v0  ;;  %v4523_v21 = vld [vmem:[#allocation14_spill] sm:$0xff] }
 0x8fe   : > { %v2367_v39 = vadd.f32 %v2335_v6, %v3255_v41 }
 0x900   : > { %2399 = vst.msk [vmem:[%s4238_s22 + $0x60] sm:$0xff] %vm807_vm0, %v2367_v39 }
 0x902   : > { %v2205_v32 = vpop.permute.xlu2 %2204  ;;  %v2179_v31 = vpop.permute.xlu1 %2178 }
 0x903   : > { %v2336_v3 = vmul.f32 %v2205_v32, %v3595_v40  ;;  %v2332_v5 = vmul.f32 %v2179_v31, %v3551_v35  ;;  %v4504_v40 = vld [vmem:[#allocation30_spill] sm:$0xff]  ;;  %v4524_v31 = vld [vmem:[#allocation39_spill] sm:$0xff] }
 0x905   : > { %v2368_v16 = vadd.f32 %v2336_v3, %v4500_v27  ;;  %v2364_v50 = vadd.f32 %v2332_v5, %v4501_v14  ;;  %v4525_v5 = vld [vmem:[#allocation32_spill] sm:$0xff] }
 0x907   : > { %2400 = vst.msk [vmem:[%s4238_s22 + $0x68] sm:$0xff] %vm807_vm0, %v2368_v16  ;;  %v4526_v16 = vld [vmem:[#allocation20_spill] sm:$0xff] }
 0x908   : > { %2396 = vst.msk [vmem:[%s4238_s22 + $0x48] sm:$0xff] %vm807_vm0, %v2364_v50  ;;  %v4527_v50 = vld [vmem:[#allocation16_spill] sm:$0xff] }
 0x90a   : > { %v2218_v41 = vpop.permute.xlu2 %2217  ;;  %v2192_v0 = vpop.permute.xlu1 %2191 }
 0x90b   : > { %v2338_v13 = vmul.f32 %v2218_v41, %v4502_v34  ;;  %v2334_v53 = vmul.f32 %v2192_v0, %v4503_v48  ;;  %v2231_v25 = vpop.permute.xlu0 %2230 }
 0x90c   : > { %v2340_v4 = vmul.f32 %v2231_v25, %v4504_v40  ;;  %v4530_v40 = vld [vmem:[#allocation24_spill] sm:$0xff] }
 0x90d   : > { %v2370_v35 = vadd.f32 %v2338_v13, %v4505_v63  ;;  %v2366_v2 = vadd.f32 %v2334_v53, %v4506_v22  ;;  %v4528_v13 = vld [vmem:[#allocation41_spill] sm:$0xff]  ;;  %v4529_v53 = vld [vmem:[#allocation40_spill] sm:$0xff]  ;;  %v4531_v63 = vld [vmem:[#allocation19_spill] sm:$0xff] }
 0x90e   : > { %v2372_v10 = vadd.f32 %v2340_v4, %v4507_v55  ;;  %v4532_v55 = vld [vmem:[#allocation45_spill] sm:$0xff] }
 0x90f   : > { %2402 = vst.msk [vmem:[%s4238_s22 + $0x78] sm:$0xff] %vm807_vm0, %v2370_v35 }
 0x910   : > { %2398 = vst.msk [vmem:[%s4238_s22 + $0x58] sm:$0xff] %vm807_vm0, %v2366_v2 }
 0x911   : > { %2404 = vst.msk [vmem:[%s4238_s22 + $0x88] sm:$0xff] %vm807_vm0, %v2372_v10 }
 0x91a   : > { %v2212_v7 = vpop.permute.xlu1 %2211  ;;  %v2238_v24 = vpop.permute.xlu2 %2237 }
 0x91b   : > { %v2337_v45 = vmul.f32 %v2212_v7, %v4508_v23  ;;  %v2341_v11 = vmul.f32 %v2238_v24, %v4509_v43  ;;  %v2264_v54 = vpop.permute.xlu0 %2263  ;;  %v4533_v7 = vld [vmem:[#allocation42_spill] sm:$0xff]  ;;  %v4534_v23 = vld [vmem:[#allocation23_spill] sm:$0xff]  ;;  %v4535_v43 = vld [vmem:[#allocation21_spill] sm:$0xff] }
 0x91c   : > { %v2345_v26 = vmul.f32 %v2264_v54, %v4510_v47  ;;  %v4536_v47 = vld [vmem:[#allocation43_spill] sm:$0xff] }
 0x91d   : > { %v2369_v29 = vadd.f32 %v2337_v45, %v4511_v1  ;;  %v2373_v36 = vadd.f32 %v2341_v11, %v4512_v59  ;;  %v4537_v1 = vld [vmem:[#allocation22_spill] sm:$0xff] }
 0x91e   : > { %v2377_v9 = vadd.f32 %v2345_v26, %v4513_v18 }
 0x91f   : > { %2401 = vst.msk [vmem:[%s4238_s22 + $0x70] sm:$0xff] %vm807_vm0, %v2369_v29 }
 0x920   : > { %2405 = vst.msk [vmem:[%s4238_s22 + $0x90] sm:$0xff] %vm807_vm0, %v2373_v36  ;;  %v4538_v36 = vld [vmem:[#allocation44_spill] sm:$0xff] }
 0x921   : > { %2409 = vst.msk [vmem:[%s4238_s22 + $0xb0] sm:$0xff] %vm807_vm0, %v2377_v9  ;;  %v4539_v9 = vld [vmem:[#allocation25_spill] sm:$0xff] }
 0x922   : > { %v2251_v42 = vpop.permute.xlu2 %2250  ;;  %v2225_v33 = vpop.permute.xlu1 %2224 }
 0x923   : > { %v2343_v15 = vmul.f32 %v2251_v42, %v4514_v30  ;;  %v2339_v44 = vmul.f32 %v2225_v33, %v4515_v37 }
 0x925   : > { %v2375_v62 = vadd.f32 %v2343_v15, %v4516_v57  ;;  %v2371_v12 = vadd.f32 %v2339_v44, %v4517_v17 }
 0x927   : > { %2407 = vst.msk [vmem:[%s4238_s22 + $0xa0] sm:$0xff] %vm807_vm0, %v2375_v62 }
 0x928   : > { %2403 = vst.msk [vmem:[%s4238_s22 + $0x80] sm:$0xff] %vm807_vm0, %v2371_v12 }
 0x92b   : > { %v2296_v46 = vpop.permute.xlu0 %2295 }
 0x92c   : > { %v2350_v52 = vmul.f32 %v2296_v46, %v4518_v56 }
 0x92e   : > { %v2382_v51 = vadd.f32 %v2350_v52, %v4519_v38 }
 0x930   : > { %2414 = vst.msk [vmem:[%s4238_s22 + $0xd8] sm:$0xff] %vm807_vm0, %v2382_v51 }
 0x932   : > { %v2270_v60 = vpop.permute.xlu2 %2269  ;;  %v2244_v28 = vpop.permute.xlu1 %2243 }
 0x933   : > { %v2346_v20 = vmul.f32 %v2270_v60, %v4520_v61  ;;  %v2342_v19 = vmul.f32 %v2244_v28, %v4521_v49 }
 0x935   : > { %v2378_v58 = vadd.f32 %v2346_v20, %v4522_v8  ;;  %v2374_v6 = vadd.f32 %v2342_v19, %v4523_v21 }
 0x937   : > { %2410 = vst.msk [vmem:[%s4238_s22 + $0xb8] sm:$0xff] %vm807_vm0, %v2378_v58 }
 0x938   : > { %2406 = vst.msk [vmem:[%s4238_s22 + $0x98] sm:$0xff] %vm807_vm0, %v2374_v6 }
 0x93a   : > { %v2283_v39 = vpop.permute.xlu2 %2282  ;;  %v2257_v32 = vpop.permute.xlu1 %2256 }
 0x93b   : > { %v2348_v3 = vmul.f32 %v2283_v39, %v4524_v31  ;;  %v2344_v27 = vmul.f32 %v2257_v32, %v4525_v5 }
 0x93d   : > { %v2380_v14 = vadd.f32 %v2348_v3, %v4526_v16  ;;  %v2376_v41 = vadd.f32 %v2344_v27, %v4527_v50 }
 0x93f   : > { %2412 = vst.msk [vmem:[%s4238_s22 + $0xc8] sm:$0xff] %vm807_vm0, %v2380_v14 }
 0x940   : > { %2408 = vst.msk [vmem:[%s4238_s22 + $0xa8] sm:$0xff] %vm807_vm0, %v2376_v41 }
 0x94a   : > { %v2303_v0 = vpop.permute.xlu2 %2302  ;;  %v2277_v34 = vpop.permute.xlu1 %2276 }
 0x94b   : > { %v2351_v48 = vmul.f32 %v2303_v0, %v4528_v13  ;;  %v2347_v25 = vmul.f32 %v2277_v34, %v4529_v53 }
 0x94d   : > { %v2383_v4 = vadd.f32 %v2351_v48, %v4530_v40  ;;  %v2379_v35 = vadd.f32 %v2347_v25, %v4531_v63 }
 0x94f   : > { %2415 = vst.msk [vmem:[%s4238_s22 + $0xe0] sm:$0xff] %vm807_vm0, %v2383_v4 }
 0x950   : > { %2411 = vst.msk [vmem:[%s4238_s22 + $0xc0] sm:$0xff] %vm807_vm0, %v2379_v35 }
 0x952   : > { %v2316_v22 = vpop.permute.xlu2 %2315  ;;  %v2290_v2 = vpop.permute.xlu1 %2289 }
 0x953   : > { %v2353_v10 = vmul.f32 %v2316_v22, %v4532_v55  ;;  %v2349_v24 = vmul.f32 %v2290_v2, %v4533_v7 }
 0x955   : > { %v2385_v45 = vadd.f32 %v2353_v10, %v4534_v23  ;;  %v2381_v11 = vadd.f32 %v2349_v24, %v4535_v43 }
 0x957   : > { %2417 = vst.msk [vmem:[%s4238_s22 + $0xf0] sm:$0xff] %vm807_vm0, %v2385_v45 }
 0x958   : > { %2413 = vst.msk [vmem:[%s4238_s22 + $0xd0] sm:$0xff] %vm807_vm0, %v2381_v11 }
 0x962   : > { %v2309_v54 = vpop.permute.xlu1 %2308 }
 0x963   : > { %v2352_v26 = vmul.f32 %v2309_v54, %v4536_v47 }
 0x965   : > { %v2384_v29 = vadd.f32 %v2352_v26, %v4537_v1 }
 0x967   : > { %2416 = vst.msk [vmem:[%s4238_s22 + $0xe8] sm:$0xff] %vm807_vm0, %v2384_v29 }
 0x96a   : > { %v2322_v59 = vpop.permute.xlu1 %2321 }
 0x96b   : > { %v2354_v18 = vmul.f32 %v2322_v59, %v4538_v36 }
 0x96d   : > { %v2386_v42 = vadd.f32 %v2354_v18, %v4539_v9 }
 0x96f   : > { %2418 = vst.msk [vmem:[%s4238_s22 + $0xf8] sm:$0xff] %vm807_vm0, %v2386_v42 }
 0x970   : > { %2957 = shalt.err (!%p2954_p3)
}
 0x971   : > { %s2996_s20 = smov 128   ;;  %s2997_s22 = smov 8  }
 0x972   : > { %2850 = dma.vmem_to_hbm [thread:$0]  (%p3084_p5), %s2433_s27, 4096, %s2435_s28, %s2420_s7, %s2996_s20, %s2996_s20, %s2997_s22  }
 0x973 PF: > { %p2856_p4 = scmp.ge.s32.totalorder %s2992_s10, 2  ;;  %s2449_s24 = sand.u32 1, %s2980_s29  }
 0x974   : > { %s2450_s25 = scalar_lea.sflag [#allocation4], %s2449_s24 }
 0x975   : > { %p2853_p7 = pnand %p2856_p4, %p3088_p6 }
 0x977   : > { %p2854_p8 = pneg %p2853_p7 }
 0x979   : > { %2975 = dma.done.wait (%p2854_p8), %s2450_s25, 4096  }
 0x97a   : > { %2977 = vsyncadd (%p2854_p8), %s2450_s25, 4294963200  ;;  %p19_p9 = scmp.ge.s32.totalorder %s3071_s12, 4   ;;  %s4540_s29 = smov %s2984_s30 }
 0x97b   : > { %s4541_s30 = smov %s2988_s9  ;;  %s4542_s9 = smov %s3082_s15 }
 0x97c   : > { %s4543_s10 = smov %s3071_s12  ;;  %21 = sbr.rel (!%p19_p9) target bundleno = 5 (0x5), region = 106 }
 0x981   :  { %2456 = vsyncpa [#allocation4], 1 }
 0x982   :  { %2458 = vsyncpa [#allocation4 + $0x1], 1 }

</bundles_post_ra>
